<compile_context>
chip_gen: v7x
topology: tpu7x:2x2x1
jax: 0.10.0
libtpu: 0.0.40
codegen_flags: <defaults>
</compile_context>

<pallas_src>
import jax
import jax.numpy as jnp
from jax.experimental import pallas as pl
from jax.experimental.pallas import tpu as pltpu

# Lane-aligned (multiple-of-128) padded dimensions.
K_RAW = 784           # 1*28*28 flattened input
K_IN = 896            # 784 padded to 7*128
H1, H2, H3 = 512, 256, 128
N_CLASSES = 10
N_OUT_PAD = 128       # 10 padded to a full 128-lane tile (lane-dense store)

MIN_TILE_M = 16       # bf16 LHS sublane packing -> tiles of 16 rows
MAX_TILE_M = 512      # multiple of 128; sweepable (256/512/1024)


def _round_up(n, m):
    return ((n + m - 1) // m) * m


def _tile_m(batch):
    """Pick the batch tile: multiple of 16, capped at MAX_TILE_M, and — when
    the batch is big enough — small enough that we get >= 2 grid steps so the
    'parallel' axis can shard across v7x's two TensorCores."""
    if batch >= 2 * MIN_TILE_M:
        tm = _round_up(-(-batch // 2), MIN_TILE_M)   # cdiv(B, 2) rounded to 16
        return min(MAX_TILE_M, tm)
    return _round_up(max(batch, 1), MIN_TILE_M)


def _mlp_kernel(x_ref,
                w1_ref, b1_ref,
                w2_ref, b2_ref,
                w3_ref, b3_ref,
                w4_ref, b4_ref,
                o_ref):
    # Layer 1: (TM,896)bf16 @ (896,512)bf16 -> f32 acc, +bias, ReLU (f32).
    h = jnp.dot(x_ref[...], w1_ref[...], preferred_element_type=jnp.float32)
    h = jnp.maximum(h + b1_ref[...], 0.0)
    # Layer 2: (TM,512) @ (512,256)
    h = jnp.dot(h.astype(jnp.bfloat16), w2_ref[...],
                preferred_element_type=jnp.float32)
    h = jnp.maximum(h + b2_ref[...], 0.0)
    # Layer 3: (TM,256) @ (256,128)
    h = jnp.dot(h.astype(jnp.bfloat16), w3_ref[...],
                preferred_element_type=jnp.float32)
    h = jnp.maximum(h + b3_ref[...], 0.0)
    # Layer 4 (logits, no activation): (TM,128) @ (128,128 padded)
    h = jnp.dot(h.astype(jnp.bfloat16), w4_ref[...],
                preferred_element_type=jnp.float32)
    o_ref[...] = (h + b4_ref[...]).astype(o_ref.dtype)


@jax.jit
def fashion_classifier_forward(x_nchw, params):
    """x_nchw: (B, 1, 28, 28). Returns logits (B, 10) float32."""
    B = x_nchw.shape[0]
    # nn.Flatten + cast to bf16 + pad M/K: fuses into one XLA op (and may fuse
    # straight into the pallas_call input via allow_input_fusion below).
    x = x_nchw.reshape(B, -1).astype(jnp.bfloat16)        # (B, 784) bf16

    tm = _tile_m(B)
    n_tiles = pl.cdiv(B, tm)
    b_pad = n_tiles * tm
    x = jnp.pad(x, ((0, b_pad - B), (0, K_IN - K_RAW)))   # zero-pad M and K

    w1, b1, w2, b2, w3, b3, w4, b4 = params

    def _resident(shape):
        # Full-array block, constant index map -> stays VMEM-resident, no
        # re-DMA across batch tiles.  (pipeline_mode=pl.Buffered(1) would
        # reclaim the unused second buffer; skipped as a marginal v7x-only
        # headroom win.)
        return pl.BlockSpec(shape, lambda i: (0, 0))

    in_specs = [
        pl.BlockSpec((tm, K_IN), lambda i: (i, 0)),        # x: tiled over batch
        _resident(w1.shape), _resident(b1.shape),
        _resident(w2.shape), _resident(b2.shape),
        _resident(w3.shape), _resident(b3.shape),
        _resident(w4.shape), _resident(b4.shape),
    ]
    out_spec = pl.BlockSpec((tm, N_OUT_PAD), lambda i: (i, 0))

    out = pl.pallas_call(
        _mlp_kernel,
        out_shape=jax.ShapeDtypeStruct((b_pad, N_OUT_PAD), jnp.float32),
        grid=(n_tiles,),
        in_specs=in_specs,
        out_specs=out_spec,
        compiler_params=pltpu.CompilerParams(
            dimension_semantics=("parallel",),        # shard tiles on v7x's 2 TCs
            vmem_limit_bytes=32 << 20,                # matches TM up to 512/1024
            allow_input_fusion=[True] + [False] * 8,  # fuse x pad/convert in
        ),
    )(x, w1, b1, w2, b2, w3, b3, w4, b4)

    return out[:B, :N_CLASSES]


def init_params(key):
    """Synthetic params matching the PyTorch module (weights transposed to
    (in, out)), zero-padded to lane-aligned shapes and stored as bf16
    (biases kept f32, padded along the output dim where needed)."""
    dims = [(K_RAW, H1), (H1, H2), (H2, H3), (H3, N_CLASSES)]
    pad_in = {K_RAW: K_IN}
    pad_out = {N_CLASSES: N_OUT_PAD}
    params = []
    for fan_in, fan_out in dims:
        key, kw, kb = jax.random.split(key, 3)
        bound = 1.0 / (fan_in ** 0.5)            # PyTorch nn.Linear default range
        w = jax.random.uniform(kw, (fan_in, fan_out), jnp.float32, -bound, bound)
        b = jax.random.uniform(kb, (1, fan_out), jnp.float32, -bound, bound)
        in_p = pad_in.get(fan_in, fan_in)
        out_p = pad_out.get(fan_out, fan_out)
        w = jnp.pad(w, ((0, in_p - fan_in), (0, out_p - fan_out)))
        b = jnp.pad(b, ((0, 0), (0, out_p - fan_out)))
        params += [w.astype(jnp.bfloat16), b.astype(jnp.float32)]
    return tuple(params)


def _reference_forward(x_nchw, params):
    """Plain-JAX reference mirroring the kernel math (bf16 dot inputs,
    f32 accumulation)."""
    w1, b1, w2, b2, w3, b3, w4, b4 = params
    B = x_nchw.shape[0]
    x = x_nchw.reshape(B, -1).astype(jnp.bfloat16)
    x = jnp.pad(x, ((0, 0), (0, K_IN - K_RAW)))
    h = jnp.maximum(jnp.dot(x, w1, preferred_element_type=jnp.float32) + b1, 0.0)
    h = jnp.maximum(jnp.dot(h.astype(jnp.bfloat16), w2,
                            preferred_element_type=jnp.float32) + b2, 0.0)
    h = jnp.maximum(jnp.dot(h.astype(jnp.bfloat16), w3,
                            preferred_element_type=jnp.float32) + b3, 0.0)
    h = jnp.dot(h.astype(jnp.bfloat16), w4,
                preferred_element_type=jnp.float32) + b4
    return h[:, :N_CLASSES]


if __name__ == "__main__":
    key = jax.random.PRNGKey(0)
    kx, kp = jax.random.split(key)

    # Fashion-MNIST-like input: batch=2, 1 channel, 28x28 (NCHW like PyTorch).
    x = jax.random.normal(kx, (2, 1, 28, 28), dtype=jnp.float32)
    params = init_params(kp)

    logits = fashion_classifier_forward(x, params)
    logits = jax.block_until_ready(logits)

    ref = _reference_forward(x, params)
    assert logits.shape == (2, N_CLASSES)
    assert jnp.allclose(logits, ref, atol=1e-2, rtol=1e-2), (
        f"max abs diff {jnp.max(jnp.abs(logits - ref))}")

    print("KERNEL_OK")
</pallas_src>

<mosaic_0001>
module attributes {stable_mosaic.version = 11 : i64} {
  func.func @_mlp_kernel(%arg0: i32, %arg1: memref<16x896xbf16, #tpu.memory_space<vmem>>, %arg2: memref<896x512xbf16, #tpu.memory_space<vmem>>, %arg3: memref<1x512xf32, #tpu.memory_space<vmem>>, %arg4: memref<512x256xbf16, #tpu.memory_space<vmem>>, %arg5: memref<1x256xf32, #tpu.memory_space<vmem>>, %arg6: memref<256x128xbf16, #tpu.memory_space<vmem>>, %arg7: memref<1x128xf32, #tpu.memory_space<vmem>>, %arg8: memref<128x128xbf16, #tpu.memory_space<vmem>>, %arg9: memref<1x128xf32, #tpu.memory_space<vmem>>, %arg10: memref<16x128xf32, #tpu.memory_space<vmem>>) attributes {dimension_semantics = [#tpu.dimension_semantics<parallel>], iteration_bounds = array<i64: 1>, scalar_prefetch = 0 : i64, scratch_operands = 0 : i64, tpu.core_type = #tpu.core_type<tc>, window_params = [{transform_indices = @transform_0, window_bounds = array<i64: 16, 896>}, {pipeline_mode = #tpu.pipeline_mode<synchronous>, transform_indices = @transform_1, window_bounds = array<i64: 896, 512>}, {pipeline_mode = #tpu.pipeline_mode<synchronous>, transform_indices = @transform_2, window_bounds = array<i64: 1, 512>}, {pipeline_mode = #tpu.pipeline_mode<synchronous>, transform_indices = @transform_3, window_bounds = array<i64: 512, 256>}, {pipeline_mode = #tpu.pipeline_mode<synchronous>, transform_indices = @transform_4, window_bounds = array<i64: 1, 256>}, {pipeline_mode = #tpu.pipeline_mode<synchronous>, transform_indices = @transform_5, window_bounds = array<i64: 256, 128>}, {pipeline_mode = #tpu.pipeline_mode<synchronous>, transform_indices = @transform_6, window_bounds = array<i64: 1, 128>}, {pipeline_mode = #tpu.pipeline_mode<synchronous>, transform_indices = @transform_7, window_bounds = array<i64: 128, 128>}, {pipeline_mode = #tpu.pipeline_mode<synchronous>, transform_indices = @transform_8, window_bounds = array<i64: 1, 128>}, {transform_indices = @transform_9, window_bounds = array<i64: 16, 128>}]} {
    %c0 = arith.constant 0 : index
    %c0_0 = arith.constant 0 : index
    %0 = vector.load %arg1[%c0, %c0_0] : memref<16x896xbf16, #tpu.memory_space<vmem>>, vector<16x896xbf16>
    %c0_1 = arith.constant 0 : index
    %c0_2 = arith.constant 0 : index
    %1 = vector.load %arg2[%c0_1, %c0_2] : memref<896x512xbf16, #tpu.memory_space<vmem>>, vector<896x512xbf16>
    %cst = arith.constant dense<0.000000e+00> : vector<16x512xf32>
    %2 = tpu.matmul %0, %1, %cst {dimension_numbers = #tpu.dot_dimension_numbers<[1], [0], [0], [1], [0, 0, 1, 1], [], []>} : vector<16x896xbf16>, vector<896x512xbf16>, vector<16x512xf32> -> vector<16x512xf32>
    %c0_3 = arith.constant 0 : index
    %c0_4 = arith.constant 0 : index
    %3 = vector.load %arg3[%c0_3, %c0_4] : memref<1x512xf32, #tpu.memory_space<vmem>>, vector<1x512xf32>
    %4 = vector.broadcast %3 : vector<1x512xf32> to vector<16x512xf32>
    %5 = arith.addf %2, %4 : vector<16x512xf32>
    %cst_5 = arith.constant 0.000000e+00 : f32
    %6 = vector.broadcast %cst_5 : f32 to vector<16x512xf32>
    %7 = arith.maximumf %5, %6 : vector<16x512xf32>
    %8 = arith.truncf %7 : vector<16x512xf32> to vector<16x512xbf16>
    %c0_6 = arith.constant 0 : index
    %c0_7 = arith.constant 0 : index
    %9 = vector.load %arg4[%c0_6, %c0_7] : memref<512x256xbf16, #tpu.memory_space<vmem>>, vector<512x256xbf16>
    %cst_8 = arith.constant dense<0.000000e+00> : vector<16x256xf32>
    %10 = tpu.matmul %8, %9, %cst_8 {dimension_numbers = #tpu.dot_dimension_numbers<[1], [0], [0], [1], [0, 0, 1, 1], [], []>} : vector<16x512xbf16>, vector<512x256xbf16>, vector<16x256xf32> -> vector<16x256xf32>
    %c0_9 = arith.constant 0 : index
    %c0_10 = arith.constant 0 : index
    %11 = vector.load %arg5[%c0_9, %c0_10] : memref<1x256xf32, #tpu.memory_space<vmem>>, vector<1x256xf32>
    %12 = vector.broadcast %11 : vector<1x256xf32> to vector<16x256xf32>
    %13 = arith.addf %10, %12 : vector<16x256xf32>
    %cst_11 = arith.constant 0.000000e+00 : f32
    %14 = vector.broadcast %cst_11 : f32 to vector<16x256xf32>
    %15 = arith.maximumf %13, %14 : vector<16x256xf32>
    %16 = arith.truncf %15 : vector<16x256xf32> to vector<16x256xbf16>
    %c0_12 = arith.constant 0 : index
    %c0_13 = arith.constant 0 : index
    %17 = vector.load %arg6[%c0_12, %c0_13] : memref<256x128xbf16, #tpu.memory_space<vmem>>, vector<256x128xbf16>
    %cst_14 = arith.constant dense<0.000000e+00> : vector<16x128xf32>
    %18 = tpu.matmul %16, %17, %cst_14 {dimension_numbers = #tpu.dot_dimension_numbers<[1], [0], [0], [1], [0, 0, 1, 1], [], []>} : vector<16x256xbf16>, vector<256x128xbf16>, vector<16x128xf32> -> vector<16x128xf32>
    %c0_15 = arith.constant 0 : index
    %c0_16 = arith.constant 0 : index
    %19 = vector.load %arg7[%c0_15, %c0_16] : memref<1x128xf32, #tpu.memory_space<vmem>>, vector<1x128xf32>
    %20 = vector.broadcast %19 : vector<1x128xf32> to vector<16x128xf32>
    %21 = arith.addf %18, %20 : vector<16x128xf32>
    %cst_17 = arith.constant 0.000000e+00 : f32
    %22 = vector.broadcast %cst_17 : f32 to vector<16x128xf32>
    %23 = arith.maximumf %21, %22 : vector<16x128xf32>
    %24 = arith.truncf %23 : vector<16x128xf32> to vector<16x128xbf16>
    %c0_18 = arith.constant 0 : index
    %c0_19 = arith.constant 0 : index
    %25 = vector.load %arg8[%c0_18, %c0_19] : memref<128x128xbf16, #tpu.memory_space<vmem>>, vector<128x128xbf16>
    %cst_20 = arith.constant dense<0.000000e+00> : vector<16x128xf32>
    %26 = tpu.matmul %24, %25, %cst_20 {dimension_numbers = #tpu.dot_dimension_numbers<[1], [0], [0], [1], [0, 0, 1, 1], [], []>} : vector<16x128xbf16>, vector<128x128xbf16>, vector<16x128xf32> -> vector<16x128xf32>
    %c0_21 = arith.constant 0 : index
    %c0_22 = arith.constant 0 : index
    %27 = vector.load %arg9[%c0_21, %c0_22] : memref<1x128xf32, #tpu.memory_space<vmem>>, vector<1x128xf32>
    %28 = vector.broadcast %27 : vector<1x128xf32> to vector<16x128xf32>
    %29 = arith.addf %26, %28 : vector<16x128xf32>
    %c0_23 = arith.constant 0 : index
    %c0_24 = arith.constant 0 : index
    %30 = vector.load %arg10[%c0_23, %c0_24] : memref<16x128xf32, #tpu.memory_space<vmem>>, vector<16x128xf32>
    tpu.vector_store %arg10[%c0_23, %c0_24], %29 {strides = array<i32>} : memref<16x128xf32, #tpu.memory_space<vmem>>, vector<16x128xf32>,
    return
  }
  func.func @transform_0(%arg0: i32) -> (i32, i32) {
    %c0_i32 = arith.constant 0 : i32
    %c0_i32_0 = arith.constant 0 : i32
    return %arg0, %c0_i32 : i32, i32
  }
  func.func @transform_1(%arg0: i32) -> (i32, i32) {
    %c0_i32 = arith.constant 0 : i32
    %c0_i32_0 = arith.constant 0 : i32
    %c0_i32_1 = arith.constant 0 : i32
    return %c0_i32, %c0_i32_0 : i32, i32
  }
  func.func @transform_2(%arg0: i32) -> (i32, i32) {
    %c0_i32 = arith.constant 0 : i32
    %c0_i32_0 = arith.constant 0 : i32
    %c0_i32_1 = arith.constant 0 : i32
    return %c0_i32, %c0_i32_0 : i32, i32
  }
  func.func @transform_3(%arg0: i32) -> (i32, i32) {
    %c0_i32 = arith.constant 0 : i32
    %c0_i32_0 = arith.constant 0 : i32
    %c0_i32_1 = arith.constant 0 : i32
    return %c0_i32, %c0_i32_0 : i32, i32
  }
  func.func @transform_4(%arg0: i32) -> (i32, i32) {
    %c0_i32 = arith.constant 0 : i32
    %c0_i32_0 = arith.constant 0 : i32
    %c0_i32_1 = arith.constant 0 : i32
    return %c0_i32, %c0_i32_0 : i32, i32
  }
  func.func @transform_5(%arg0: i32) -> (i32, i32) {
    %c0_i32 = arith.constant 0 : i32
    %c0_i32_0 = arith.constant 0 : i32
    %c0_i32_1 = arith.constant 0 : i32
    return %c0_i32, %c0_i32_0 : i32, i32
  }
  func.func @transform_6(%arg0: i32) -> (i32, i32) {
    %c0_i32 = arith.constant 0 : i32
    %c0_i32_0 = arith.constant 0 : i32
    %c0_i32_1 = arith.constant 0 : i32
    return %c0_i32, %c0_i32_0 : i32, i32
  }
  func.func @transform_7(%arg0: i32) -> (i32, i32) {
    %c0_i32 = arith.constant 0 : i32
    %c0_i32_0 = arith.constant 0 : i32
    %c0_i32_1 = arith.constant 0 : i32
    return %c0_i32, %c0_i32_0 : i32, i32
  }
  func.func @transform_8(%arg0: i32) -> (i32, i32) {
    %c0_i32 = arith.constant 0 : i32
    %c0_i32_0 = arith.constant 0 : i32
    %c0_i32_1 = arith.constant 0 : i32
    return %c0_i32, %c0_i32_0 : i32, i32
  }
  func.func @transform_9(%arg0: i32) -> (i32, i32) {
    %c0_i32 = arith.constant 0 : i32
    %c0_i32_0 = arith.constant 0 : i32
    return %arg0, %c0_i32 : i32, i32
  }
}

</mosaic_0001>

<bundles_post_ra>
// kernel: fashion_classifier_forward.2
= control target key start
LH: loop header
LB: loop body
LE: loop exit
PB: predicated region body
PF: predicated region fallthrough
CT: control target
= control target key end

     0   :  { %s4066_s0 = inlined_call_operand.hbm [shape: bf16[896,512], index: 0, kind: input, shape index: {}]   ;;  %s4067_s1 = inlined_call_operand.vmem [shape: f32[1,512], index: 1, kind: input, shape index: {}]   ;;  %s4068_s2 = inlined_call_operand.hbm [shape: bf16[512,256], index: 2, kind: input, shape index: {}]   ;;  %s4069_s3 = inlined_call_operand.vmem [shape: f32[1,256], index: 3, kind: input, shape index: {}]   ;;  %s4070_s4 = inlined_call_operand.vmem [shape: bf16[256,128], index: 4, kind: input, shape index: {}]   ;;  %s4071_s5 = inlined_call_operand.vmem [shape: f32[1,128], index: 5, kind: input, shape index: {}]   ;;  %s4072_s6 = inlined_call_operand.hbm [shape: bf16[128,128], index: 6, kind: input, shape index: {}]   ;;  %s4073_s7 = inlined_call_operand.vmem [shape: f32[1,128], index: 7, kind: input, shape index: {}]   ;;  %s4074_s8 = inlined_call_operand.vmem [shape: bf16[2,784], index: 8, kind: input, shape index: {}]   ;;  %s4075_s9 = inlined_call_operand.<no memory space> [shape: bf16[], index: 9, kind: input, shape index: {}]   ;;  %s4076_s10 = inlined_call_operand.vmem [shape: f32[16,128], index: 10, kind: output, shape index: {}]  }
   0x1   :  { %v15_v0 = vstv %s4075_s9 }
   0x2   :  { %v3863_v1 = vunpack.i.l.bf16 %v15_v0 }
   0x3   :  { %20 = vsyncpa [#allocation8], 0 }
   0x4   :  { %21 = vsyncpa [#allocation10], 0  ;;  %s3793_s15 = smov [#allocation9]   ;;  %s3723_s19 = scalar_lea.hbm %s4068_s2, 8192 }
   0x5   :  { %s43_s16 = sshll.u32 %s3793_s15, 4  ;;  %p3724_p0 = scmp.ne.s32.totalorder %s4068_s2, %s3723_s19  ;;  %s44_s16 = int_to_ptr.vmem [resolvable:$true] %s43_s16 }
   0x6   :  { %p3727_p1 = scmp.lt.u32.totalorder %s3723_s19, %s4068_s2 }
   0x8   :  { %p3729_p2 = pnand %p3727_p1, %p3724_p0 }
   0xa   :  { %3732 = shalt.err (!%p3729_p2)
}
   0xb   :  { %s3733_s9 = scalar_lea.vmem %s44_s16, 8192  ;;  %p3738_p4 = scmp.lt.s32.totalorder %s44_s16, %s44_s16 }
   0xc   :  { %p3734_p3 = scmp.ne.s32.totalorder %s44_s16, %s3733_s9  ;;  %p3739_p5 = scmp.lt.s32.totalorder %s3733_s9, %s3733_s9 }
   0xe   :  { %p3740_p6 = por %p3739_p5, %p3738_p4 }
  0x10   :  { %p3741_p7 = pnand %p3740_p6, %p3734_p3 }
  0x12   :  { %3744 = shalt.err (!%p3741_p7)
}
  0x13   :  { %s3794_s24 = smov 128   ;;  %s3795_s25 = smov 8  }
  0x14   :  { %49 = dma.hbm_to_vmem [thread:$0]  %s4068_s2, 8192, %s44_s16, [#allocation10], %s3794_s24, %s3794_s24, %s3795_s25  }
  0x15   :  { %s3796_s28 = smov [#allocation7]   ;;  %s3745_s12 = scalar_lea.hbm %s4066_s0, 28672 }
  0x16   :  { %s29_s29 = sshll.u32 %s3796_s28, 4  ;;  %p3746_p8 = scmp.ne.s32.totalorder %s4066_s0, %s3745_s12  ;;  %s30_s29 = int_to_ptr.vmem [resolvable:$true] %s29_s29 }
  0x17   :  { %p3749_p9 = scmp.lt.u32.totalorder %s3745_s12, %s4066_s0 }
  0x19   :  { %p3751_p10 = pnand %p3749_p9, %p3746_p8 }
  0x1b   :  { %3754 = shalt.err (!%p3751_p10)
}
  0x1c   :  { %s3755_s18 = scalar_lea.vmem %s30_s29, 28672  ;;  %p3760_p12 = scmp.lt.s32.totalorder %s30_s29, %s30_s29 }
  0x1d   :  { %p3756_p11 = scmp.ne.s32.totalorder %s30_s29, %s3755_s18  ;;  %p3761_p13 = scmp.lt.s32.totalorder %s3755_s18, %s3755_s18 }
  0x1f   :  { %p3762_p0 = por %p3761_p13, %p3760_p12 }
  0x21   :  { %p3763_p1 = pnand %p3762_p0, %p3756_p11 }
  0x23   :  { %3766 = shalt.err (!%p3763_p1)
}
  0x24   :  { %s3797_s2 = smov 256   ;;  %s3798_s16 = smov 16  }
  0x25   :  { %35 = dma.hbm_to_vmem [thread:$0]  %s4066_s0, 28672, %s30_s29, [#allocation8], %s3797_s2, %s3797_s2, %s3798_s16  }
  0x26   :  { %s3799_s21 = smov [#allocation11]   ;;  %s3767_s24 = scalar_lea.hbm %s4072_s6, 1024 }
  0x27   :  { %s61_s22 = sshll.u32 %s3799_s21, 4  ;;  %p3768_p2 = scmp.ne.s32.totalorder %s4072_s6, %s3767_s24  ;;  %s62_s22 = int_to_ptr.vmem [resolvable:$true] %s61_s22 }
  0x28   :  { %p3771_p3 = scmp.lt.u32.totalorder %s3767_s24, %s4072_s6 }
  0x2a   :  { %p3773_p4 = pnand %p3771_p3, %p3768_p2 }
  0x2c   :  { %3776 = shalt.err (!%p3773_p4)
}
  0x2d   :  { %s3777_s30 = scalar_lea.vmem %s62_s22, 1024  ;;  %p3782_p6 = scmp.lt.s32.totalorder %s62_s22, %s62_s22 }
  0x2e   :  { %p3778_p5 = scmp.ne.s32.totalorder %s62_s22, %s3777_s30  ;;  %p3783_p7 = scmp.lt.s32.totalorder %s3777_s30, %s3777_s30 }
  0x30   :  { %p3784_p8 = por %p3783_p7, %p3782_p6 }
  0x32   :  { %p3785_p9 = pnand %p3784_p8, %p3778_p5 }
  0x34   :  { %3788 = shalt.err (!%p3785_p9)
}
  0x35   :  { %s3800_s0 = smov 64   ;;  %s3801_s29 = smov 4  }
  0x36   :  { %67 = dma.hbm_to_vmem [thread:$0]  %s4072_s6, 1024, %s62_s22, [#allocation10], %s3800_s0, %s3800_s0, %s3801_s29  }
  0x37   :  { %3789 = dma.done.wait [#allocation8], 28672  }
  0x38   :  { %3790 = vsyncadd [#allocation8], 4294938624 }
  0x39   :  { %3791 = dma.done.wait [#allocation10], 9216  }
  0x3a   :  { %3792 = vsyncadd [#allocation10], 4294958080  ;;  %v3141_v2 = vpack.c.bf16 %v3863_v1, %v3863_v1  ;;  %v3802_v3 = vmov 0   ;;  %v3256_v4 = vld [vmem:[#allocation7 + $0x4] ss:$16 sps:$4 sm:$0xff]   ;;  %v85_v19 = vlaneseq  ;;  %vm3804_vm2 = vmmov 0  }
  0x3b   :  { %1824 = vmatprep.mubr.bf16.mxu1 %v3802_v3  ;;  %v3258_v5 = vld [vmem:[#allocation7 + $0x604] ss:$16 sps:$4 sm:$0xff]   ;;  %1663 = vmatprep.subr.bf16.mxu0 %v3256_v4  ;;  %v3260_v6 = vld [vmem:[#allocation7] ss:$16 sps:$4 sm:$0xff]   ;;  %v3309_v46 = vld [vmem:[#allocation7 + $0xc] ss:$16 sps:$4 sm:$0xff]  }
  0x3c   :  { %3152 = vst [vmem:[#allocation12 + $0x30] sm:$0xff] %v3141_v2   ;;  %3142 = vst [vmem:[#allocation12 + $0x20] sm:$0xff] %v3141_v2   ;;  %v3261_v7 = vld [vmem:[#allocation7 + $0x600] ss:$16 sps:$4 sm:$0xff]   ;;  %1792 = vmatprep.subr.bf16.mxu1 %v3258_v5  ;;  %v3262_v8 = vld [vmem:[#allocation7 + $0x24] ss:$16 sps:$4 sm:$0xff]   ;;  %1664 = vmatpush1.bf16.msra.mxu0 %v3260_v6 }
  0x3d   :  { %3147 = vst [vmem:[#allocation12 + $0x28] sm:$0xff] %v3141_v2   ;;  %1793 = vmatpush1.bf16.msra.mxu1 %v3261_v7  ;;  %v3264_v9 = vld [vmem:[#allocation7 + $0x624] ss:$16 sps:$4 sm:$0xff]   ;;  %v3266_v10 = vld [vmem:[#allocation7 + $0x20] ss:$16 sps:$4 sm:$0xff]   ;;  %1665 = vmatprep.subr.bf16.mxu0 %v3262_v8  ;;  %v216_v25 = vand.u32 127, %v85_v19 }
  0x3e   :  { %v3267_v11 = vld [vmem:[#allocation7 + $0x620] ss:$16 sps:$4 sm:$0xff]   ;;  %1794 = vmatprep.subr.bf16.mxu1 %v3264_v9  ;;  %v3268_v12 = vld [vmem:[#allocation7 + $0x44] ss:$16 sps:$4 sm:$0xff]   ;;  %v3904_v28 = vshrl.u32 %v85_v19, 7  ;;  %v3803_v9 = vmov 0.0  }
  0x3f   :  { %v3270_v13 = vld [vmem:[#allocation7 + $0x644] ss:$16 sps:$4 sm:$0xff]   ;;  %v3272_v14 = vld [vmem:[#allocation7 + $0x40] ss:$16 sps:$4 sm:$0xff]   ;;  %v217_v30 = vadd.s32 768, %v216_v25 }
  0x40   :  { %v3273_v15 = vld [vmem:[#allocation7 + $0x640] ss:$16 sps:$4 sm:$0xff]   ;;  %1666 = vmatpush1.bf16.msra.mxu0 %v3266_v10  ;;  %v3274_v16 = vld [vmem:[#allocation7 + $0x64] ss:$16 sps:$4 sm:$0xff]   ;;  %vm88_vm0 = vcmp.lt.s32.totalorder %v3904_v28, 2 }
  0x41   :  { %1795 = vmatpush1.bf16.msra.mxu1 %v3267_v11  ;;  %1667 = vmatprep.subr.bf16.mxu0 %v3268_v12  ;;  %v3276_v17 = vld [vmem:[#allocation7 + $0x664] ss:$16 sps:$4 sm:$0xff]   ;;  %v3278_v18 = vld [vmem:[#allocation7 + $0x60] ss:$16 sps:$4 sm:$0xff]   ;;  %vm218_vm1 = vcmp.lt.s32.totalorder %v217_v30, 784 }
  0x42   :  { %1796 = vmatprep.subr.bf16.mxu1 %v3270_v13  ;;  %v3279_v20 = vld [vmem:[#allocation7 + $0x660] ss:$16 sps:$4 sm:$0xff]   ;;  %v3280_v21 = vld [vmem:[#allocation7 + $0x84] ss:$16 sps:$4 sm:$0xff]   ;;  %v3307_v49 = vld [vmem:[#allocation7 + $0x8] ss:$16 sps:$4 sm:$0xff]  }
  0x43   :  { %v3282_v22 = vld [vmem:[#allocation7 + $0x684] ss:$16 sps:$4 sm:$0xff]   ;;  %v3284_v23 = vld [vmem:[#allocation7 + $0x80] ss:$16 sps:$4 sm:$0xff]   ;;  %v3315_v50 = vld [vmem:[#allocation7 + $0x2c] ss:$16 sps:$4 sm:$0xff]  }
  0x44   :  { %1668 = vmatpush1.bf16.msra.mxu0 %v3272_v14  ;;  %v3285_v24 = vld [vmem:[#allocation7 + $0x680] ss:$16 sps:$4 sm:$0xff]   ;;  %v3286_v26 = vld [vmem:[#allocation7 + $0xa4] ss:$16 sps:$4 sm:$0xff]   ;;  %v3313_v54 = vld [vmem:[#allocation7 + $0x28] ss:$16 sps:$4 sm:$0xff]  }
  0x45   :  { %1797 = vmatpush1.bf16.msra.mxu1 %v3273_v15  ;;  %1669 = vmatprep.subr.bf16.mxu0 %v3274_v16  ;;  %v3288_v27 = vld [vmem:[#allocation7 + $0x6a4] ss:$16 sps:$4 sm:$0xff]   ;;  %v3290_v29 = vld [vmem:[#allocation7 + $0xa0] ss:$16 sps:$4 sm:$0xff]   ;;  %v3321_v55 = vld [vmem:[#allocation7 + $0x4c] ss:$16 sps:$4 sm:$0xff]  }
  0x46   :  { %1798 = vmatprep.subr.bf16.mxu1 %v3276_v17  ;;  %v3291_v31 = vld [vmem:[#allocation7 + $0x6a0] ss:$16 sps:$4 sm:$0xff]   ;;  %v3292_v32 = vld [vmem:[#allocation7 + $0xc4] ss:$16 sps:$4 sm:$0xff]   ;;  %v3319_v58 = vld [vmem:[#allocation7 + $0x48] ss:$16 sps:$4 sm:$0xff]  }
  0x47   :  { %v3294_v33 = vld [vmem:[#allocation7 + $0x6c4] ss:$16 sps:$4 sm:$0xff]   ;;  %v3296_v35 = vld [vmem:[#allocation7 + $0xc0] ss:$16 sps:$4 sm:$0xff]   ;;  %v3327_v59 = vld [vmem:[#allocation7 + $0x6c] ss:$16 sps:$4 sm:$0xff]  }
  0x48   :  { %1670 = vmatpush1.bf16.msra.mxu0 %v3278_v18  ;;  %v2811_v34 = vld [vmem:[%s4074_s8 + $0x6] sm:$0x1]  ;;  %v3297_v37 = vld [vmem:[#allocation7 + $0x6c0] ss:$16 sps:$4 sm:$0xff]   ;;  %v3325_v4 = vld [vmem:[#allocation7 + $0x68] ss:$16 sps:$4 sm:$0xff]  }
  0x49   :  { %1799 = vmatpush1.bf16.msra.mxu1 %v3279_v20  ;;  %1671 = vmatprep.subr.bf16.mxu0 %v3280_v21  ;;  %v208_v36 = vunpack.c.l.bf16 %v2811_v34  ;;  %v3298_v38 = vld [vmem:[#allocation7 + $0xe4] ss:$16 sps:$4 sm:$0xff]   ;;  %v3302_v42 = vld [vmem:[#allocation7 + $0xe0] ss:$16 sps:$4 sm:$0xff]   ;;  %v3333_v7 = vld [vmem:[#allocation7 + $0x8c] ss:$16 sps:$4 sm:$0xff]  }
  0x4a   :  { %1800 = vmatprep.subr.bf16.mxu1 %v3282_v22  ;;  %v3300_v39 = vld [vmem:[#allocation7 + $0x6e4] ss:$16 sps:$4 sm:$0xff]   ;;  %v3303_v44 = vld [vmem:[#allocation7 + $0x6e0] ss:$16 sps:$4 sm:$0xff]   ;;  %v3331_v13 = vld [vmem:[#allocation7 + $0x88] ss:$16 sps:$4 sm:$0xff]  }
  0x4b   :  { %v214_v40 = vsel %vm88_vm0, %v208_v36, %v3863_v1  ;;  %v3304_v45 = vld [vmem:[#allocation7 + $0x104] ss:$16 sps:$4 sm:$0xff]   ;;  %v3310_v47 = vld [vmem:[#allocation7 + $0x100] ss:$16 sps:$4 sm:$0xff]   ;;  %v3339_v14 = vld [vmem:[#allocation7 + $0xac] ss:$16 sps:$4 sm:$0xff]  }
  0x4c   :  { %1672 = vmatpush1.bf16.msra.mxu0 %v3284_v23  ;;  %v219_v41 = vsel %vm218_vm1, %v214_v40, %v3863_v1  ;;  %v3311_v48 = vld [vmem:[#allocation7 + $0x124] ss:$16 sps:$4 sm:$0xff]   ;;  %v3316_v52 = vld [vmem:[#allocation7 + $0x120] ss:$16 sps:$4 sm:$0xff]   ;;  %v3337_v17 = vld [vmem:[#allocation7 + $0xa8] ss:$16 sps:$4 sm:$0xff]  }
  0x4d   :  { %1801 = vmatpush1.bf16.msra.mxu1 %v3285_v24  ;;  %1673 = vmatprep.subr.bf16.mxu0 %v3286_v26  ;;  %v3136_v43 = vpack.c.bf16 %v3863_v1, %v219_v41  ;;  %v3317_v53 = vld [vmem:[#allocation7 + $0x144] ss:$16 sps:$4 sm:$0xff]   ;;  %v3322_v56 = vld [vmem:[#allocation7 + $0x140] ss:$16 sps:$4 sm:$0xff]   ;;  %v3345_v18 = vld [vmem:[#allocation7 + $0xcc] ss:$16 sps:$4 sm:$0xff]  }
  0x4e   :  { %1802 = vmatprep.subr.bf16.mxu1 %v3288_v27  ;;  %v3323_v57 = vld [vmem:[#allocation7 + $0x164] ss:$16 sps:$4 sm:$0xff]   ;;  %v3328_v60 = vld [vmem:[#allocation7 + $0x160] ss:$16 sps:$4 sm:$0xff]   ;;  %v3343_v22 = vld [vmem:[#allocation7 + $0xc8] ss:$16 sps:$4 sm:$0xff]  }
  0x4f   :  { %3137 = vst [vmem:[#allocation12 + $0x18] sm:$0xff] %v3136_v43   ;;  %v82_v61 = vld [vmem:[%s4074_s8] sm:$0x1]  ;;  %v2806_v62 = vld [vmem:[%s4074_s8 + $0x1] sm:$0x1] }
  0x50   :  { %1674 = vmatpush1.bf16.msra.mxu0 %v3290_v29  ;;  %v3329_v63 = vld [vmem:[#allocation7 + $0x184] ss:$16 sps:$4 sm:$0xff]   ;;  %v83_v0 = vunpack.c.l.bf16 %v82_v61  ;;  %v103_v2 = vunpack.c.l.bf16 %v2806_v62  ;;  %v3334_v8 = vld [vmem:[#allocation7 + $0x180] ss:$16 sps:$4 sm:$0xff]   ;;  %v3351_v23 = vld [vmem:[#allocation7 + $0xec] ss:$16 sps:$4 sm:$0xff]  }
  0x51   :  { %1803 = vmatpush1.bf16.msra.mxu1 %v3291_v31  ;;  %1675 = vmatprep.subr.bf16.mxu0 %v3292_v32  ;;  %v3335_v12 = vld [vmem:[#allocation7 + $0x1a4] ss:$16 sps:$4 sm:$0xff]   ;;  %v3340_v15 = vld [vmem:[#allocation7 + $0x1a0] ss:$16 sps:$4 sm:$0xff]   ;;  %v3349_v26 = vld [vmem:[#allocation7 + $0xe8] ss:$16 sps:$4 sm:$0xff]  }
  0x52   :  { %1804 = vmatprep.subr.bf16.mxu1 %v3294_v33  ;;  %v89_v5 = vsel %vm88_vm0, %v83_v0, %v3863_v1  ;;  %v109_v6 = vsel %vm88_vm0, %v103_v2, %v3863_v1  ;;  %v3341_v16 = vld [vmem:[#allocation7 + $0x1c4] ss:$16 sps:$4 sm:$0xff]   ;;  %v3346_v19 = vld [vmem:[#allocation7 + $0x1c0] ss:$16 sps:$4 sm:$0xff]   ;;  %v3361_v30 = vld [vmem:[#allocation7 + $0x10c] ss:$16 sps:$4 sm:$0xff]  }
  0x53   :  { %v95_v10 = vpack.c.bf16 %v3803_v9, %v89_v5  ;;  %v116_v11 = vpack.c.bf16 %v3803_v9, %v109_v6  ;;  %v3347_v20 = vld [vmem:[#allocation7 + $0x1e4] ss:$16 sps:$4 sm:$0xff]   ;;  %v3352_v24 = vld [vmem:[#allocation7 + $0x1e0] ss:$16 sps:$4 sm:$0xff]   ;;  %v3359_v32 = vld [vmem:[#allocation7 + $0x108] ss:$16 sps:$4 sm:$0xff]  }
  0x54   :  { %1676 = vmatpush1.bf16.msra.mxu0 %v3296_v35  ;;  %v3358_v25 = vld [vmem:[#allocation7 + $0x204] ss:$16 sps:$4 sm:$0xff]   ;;  %v3356_v29 = vld [vmem:[#allocation7 + $0x200] ss:$16 sps:$4 sm:$0xff]   ;;  %v3367_v34 = vld [vmem:[#allocation7 + $0x12c] ss:$16 sps:$4 sm:$0xff]  }
  0x55   :  { %1805 = vmatpush1.bf16.msra.mxu1 %v3297_v37  ;;  %1677 = vmatprep.subr.bf16.mxu0 %v3298_v38  ;;  %97 = vst [vmem:[#allocation12] sm:$0xf] %v95_v10  ;;  %118 = vst [vmem:[#allocation12 + $0x4] sm:$0xf] %v116_v11  ;;  %v3364_v31 = vld [vmem:[#allocation7 + $0x224] ss:$16 sps:$4 sm:$0xff]  }
  0x56   :  { %1806 = vmatprep.subr.bf16.mxu1 %v3300_v39  ;;  %v3306_v51 = vld [vmem:[#allocation12 + $0x18] ss:$28 sps:$4 sm:$0xff]   ;;  %v3362_v33 = vld [vmem:[#allocation7 + $0x220] ss:$16 sps:$4 sm:$0xff]   ;;  %v3373_v38 = vld [vmem:[#allocation7 + $0x14c] ss:$16 sps:$4 sm:$0xff]  }
  0x57   :  { %v3370_v35 = vld [vmem:[#allocation7 + $0x244] ss:$16 sps:$4 sm:$0xff]   ;;  %v3365_v36 = vld [vmem:[#allocation7 + $0x128] ss:$16 sps:$4 sm:$0xff]   ;;  %v3368_v37 = vld [vmem:[#allocation7 + $0x240] ss:$16 sps:$4 sm:$0xff]  }
  0x58   :  { %1678 = vmatpush1.bf16.msra.mxu0 %v3302_v42  ;;  %v3376_v39 = vld [vmem:[#allocation7 + $0x264] ss:$16 sps:$4 sm:$0xff]   ;;  %v3371_v40 = vld [vmem:[#allocation7 + $0x148] ss:$16 sps:$4 sm:$0xff]   ;;  %v3374_v41 = vld [vmem:[#allocation7 + $0x260] ss:$16 sps:$4 sm:$0xff]  }
  0x59   :  { %1807 = vmatpush1.bf16.msra.mxu1 %v3303_v44  ;;  %1679 = vmatprep.subr.bf16.mxu0 %v3304_v45  ;;  %v3379_v42 = vld [vmem:[#allocation7 + $0x16c] ss:$16 sps:$4 sm:$0xff]   ;;  %v3382_v43 = vld [vmem:[#allocation7 + $0x284] ss:$16 sps:$4 sm:$0xff]   ;;  %v3377_v44 = vld [vmem:[#allocation7 + $0x168] ss:$16 sps:$4 sm:$0xff]  }
  0x5a   :  { %1835 = vmatprep.subr.bf16.mxu1 %v3309_v46  ;;  %v3380_v45 = vld [vmem:[#allocation7 + $0x280] ss:$16 sps:$4 sm:$0xff]   ;;  %v3385_v46 = vld [vmem:[#allocation7 + $0x18c] ss:$16 sps:$4 sm:$0xff]   ;;  %v3401_v6 = vld [vmem:[#allocation7 + $0x1e8] ss:$16 sps:$4 sm:$0xff]  }
  0x5b   :  { %v3398_v61 = vld [vmem:[#allocation7 + $0x2e0] ss:$16 sps:$4 sm:$0xff]   ;;  %v3412_v10 = vld [vmem:[#allocation7 + $0x324] ss:$16 sps:$4 sm:$0xff]   ;;  %v3407_v11 = vld [vmem:[#allocation7 + $0x208] ss:$16 sps:$4 sm:$0xff]  }
  0x5c   :  { %1680 = vmatpush1.bf16.msra.mxu0 %v3310_v47  ;;  %1825 = vmatmul.mubr.bf16.vlgmr.msra.gmra.mrb[0].mxu1 %v3306_v51  ;;  %v3355_v21 = vld [vmem:[#allocation12 + $0x4] ss:$28 sps:$4 sm:$0xff]  }
  0x5d   :  { %1681 = vmatprep.subr.bf16.mxu0 %v3311_v48  ;;  %1836 = vmatpush1.bf16.msra.mxu1 %v3307_v49  ;;  %v3929_v27 = vld [vmem:[#allocation12] ss:$28 sps:$4 sm:$0xff]   ;;  %v3388_v47 = vld [vmem:[#allocation7 + $0x2a4] ss:$16 sps:$4 sm:$0xff]   ;;  %v3383_v48 = vld [vmem:[#allocation7 + $0x188] ss:$16 sps:$4 sm:$0xff]  }
  0x5e   :  { %1837 = vmatprep.subr.bf16.mxu1 %v3315_v50  ;;  %1695 = vmatprep.mubr.bf16.mxu0 %v3355_v21  ;;  %v3386_v49 = vld [vmem:[#allocation7 + $0x2a0] ss:$16 sps:$4 sm:$0xff]   ;;  %v3391_v50 = vld [vmem:[#allocation7 + $0x1ac] ss:$16 sps:$4 sm:$0xff]   ;;  %v3394_v51 = vld [vmem:[#allocation7 + $0x2c4] ss:$16 sps:$4 sm:$0xff]  }
  0x5f   :  { %1867 = vmatprep.mubr.bf16.mxu1 %v3355_v21  ;;  %v3422_v21 = vld [vmem:[#allocation7 + $0x360] ss:$16 sps:$4 sm:$0xff]  }
  0x60   :  { %1682 = vmatpush1.bf16.msra.mxu0 %v3316_v52  ;;  %v3389_v52 = vld [vmem:[#allocation7 + $0x1a8] ss:$16 sps:$4 sm:$0xff]  }
  0x61   :  { %1683 = vmatprep.subr.bf16.mxu0 %v3317_v53  ;;  %1838 = vmatpush1.bf16.msra.mxu1 %v3313_v54  ;;  %v3392_v53 = vld [vmem:[#allocation7 + $0x2c0] ss:$16 sps:$4 sm:$0xff]   ;;  %v3397_v54 = vld [vmem:[#allocation7 + $0x1cc] ss:$16 sps:$4 sm:$0xff]  }
  0x62   :  { %1839 = vmatprep.subr.bf16.mxu1 %v3321_v55  ;;  %v3400_v55 = vld [vmem:[#allocation7 + $0x2e4] ss:$16 sps:$4 sm:$0xff]  }
  0x64   :  { %1684 = vmatpush1.bf16.msra.mxu0 %v3322_v56  ;;  %v2807_v56 = vld [vmem:[%s4074_s8 + $0x2] sm:$0x1] }
  0x65   :  { %1685 = vmatprep.subr.bf16.mxu0 %v3323_v57  ;;  %1840 = vmatpush1.bf16.msra.mxu1 %v3319_v58  ;;  %v124_v57 = vunpack.c.l.bf16 %v2807_v56  ;;  %v2808_v58 = vld [vmem:[%s4074_s8 + $0x3] sm:$0x1]  ;;  %v3472_v56 = vld [vmem:[#allocation7 + $0x34c] ss:$16 sps:$4 sm:$0xff]  }
  0x66   :  { %1841 = vmatprep.subr.bf16.mxu1 %v3327_v59  ;;  %v3395_v59 = vld [vmem:[#allocation7 + $0x1c8] ss:$16 sps:$4 sm:$0xff]  }
  0x67   :  { %v130_v62 = vsel %vm88_vm0, %v124_v57, %v3863_v1 }
  0x68   :  { %1686 = vmatpush1.bf16.msra.mxu0 %v3328_v60  ;;  %v145_v60 = vunpack.c.l.bf16 %v2808_v58  ;;  %v137_v0 = vpack.c.bf16 %v3803_v9, %v130_v62  ;;  %v3470_v62 = vld [vmem:[#allocation7 + $0x348] ss:$16 sps:$4 sm:$0xff]  }
  0x69   :  { %1687 = vmatprep.subr.bf16.mxu0 %v3329_v63  ;;  %1842 = vmatpush1.bf16.msra.mxu1 %v3325_v4  ;;  %v3403_v63 = vld [vmem:[#allocation7 + $0x1ec] ss:$16 sps:$4 sm:$0xff]   ;;  %v3406_v4 = vld [vmem:[#allocation7 + $0x304] ss:$16 sps:$4 sm:$0xff]  }
  0x6a   :  { %1843 = vmatprep.subr.bf16.mxu1 %v3333_v7  ;;  %v151_v2 = vsel %vm88_vm0, %v145_v60, %v3863_v1  ;;  %139 = vst [vmem:[#allocation12 + $0x8] sm:$0xf] %v137_v0  ;;  %v3404_v7 = vld [vmem:[#allocation7 + $0x300] ss:$16 sps:$4 sm:$0xff]   ;;  %v3478_v0 = vld [vmem:[#allocation7 + $0x36c] ss:$16 sps:$4 sm:$0xff]  }
  0x6b   :  { %v158_v5 = vpack.c.bf16 %v3803_v9, %v151_v2  ;;  %v3481_v2 = vld [vmem:[#allocation7 + $0x484] ss:$16 sps:$4 sm:$0xff]  }
  0x6c   :  { %1688 = vmatpush1.bf16.msra.mxu0 %v3334_v8  ;;  %v3409_v8 = vld [vmem:[#allocation7 + $0x20c] ss:$16 sps:$4 sm:$0xff]  }
  0x6d   :  { %1689 = vmatprep.subr.bf16.mxu0 %v3335_v12  ;;  %1844 = vmatpush1.bf16.msra.mxu1 %v3331_v13  ;;  %160 = vst [vmem:[#allocation12 + $0xc] sm:$0xf] %v158_v5  ;;  %v3410_v12 = vld [vmem:[#allocation7 + $0x320] ss:$16 sps:$4 sm:$0xff]   ;;  %v3415_v13 = vld [vmem:[#allocation7 + $0x22c] ss:$16 sps:$4 sm:$0xff]  }
  0x6e   :  { %1845 = vmatprep.subr.bf16.mxu1 %v3339_v14  ;;  %v3418_v14 = vld [vmem:[#allocation7 + $0x344] ss:$16 sps:$4 sm:$0xff]   ;;  %v3484_v5 = vld [vmem:[#allocation7 + $0x38c] ss:$16 sps:$4 sm:$0xff]  }
  0x70   :  { %1690 = vmatpush1.bf16.msra.mxu0 %v3340_v15 }
  0x71   :  { %1691 = vmatprep.subr.bf16.mxu0 %v3341_v16  ;;  %1846 = vmatpush1.bf16.msra.mxu1 %v3337_v17  ;;  %v3413_v16 = vld [vmem:[#allocation7 + $0x228] ss:$16 sps:$4 sm:$0xff]   ;;  %v3416_v17 = vld [vmem:[#allocation7 + $0x340] ss:$16 sps:$4 sm:$0xff]  }
  0x72   :  { %1847 = vmatprep.subr.bf16.mxu1 %v3345_v18  ;;  %v3421_v18 = vld [vmem:[#allocation7 + $0x24c] ss:$16 sps:$4 sm:$0xff]  }
  0x74   :  { %1692 = vmatpush1.bf16.msra.mxu0 %v3346_v19  ;;  %v3454_v15 = vld [vmem:[#allocation12 + $0xc] ss:$28 sps:$4 sm:$0xff]   ;;  %v3424_v19 = vld [vmem:[#allocation7 + $0x364] ss:$16 sps:$4 sm:$0xff]  }
  0x75   :  { %1693 = vmatprep.subr.bf16.mxu0 %v3347_v20  ;;  %1848 = vmatpush1.bf16.msra.mxu1 %v3343_v22  ;;  %v3419_v20 = vld [vmem:[#allocation7 + $0x248] ss:$16 sps:$4 sm:$0xff]   ;;  %v3427_v22 = vld [vmem:[#allocation7 + $0x26c] ss:$16 sps:$4 sm:$0xff]  }
  0x76   :  { %1849 = vmatprep.subr.bf16.mxu1 %v3351_v23  ;;  %v3430_v23 = vld [vmem:[#allocation7 + $0x384] ss:$16 sps:$4 sm:$0xff]  }
  0x78   :  { %1694 = vmatpush1.bf16.msra.mxu0 %v3352_v24  ;;  %v3425_v24 = vld [vmem:[#allocation7 + $0x268] ss:$16 sps:$4 sm:$0xff]  }
  0x79   :  { %1706 = vmatprep.subr.bf16.mxu0 %v3358_v25  ;;  %1850 = vmatpush1.bf16.msra.mxu1 %v3349_v26  ;;  %v3428_v25 = vld [vmem:[#allocation7 + $0x380] ss:$16 sps:$4 sm:$0xff]   ;;  %v3433_v26 = vld [vmem:[#allocation7 + $0x28c] ss:$16 sps:$4 sm:$0xff]  }
  0x7a   :  { %1851 = vmatprep.subr.bf16.mxu1 %v3361_v30  ;;  %v3434_v30 = vld [vmem:[#allocation7 + $0x3a0] ss:$16 sps:$4 sm:$0xff]  }
  0x7b   :  { %1696 = vmatmul.mubr.bf16.vlgmr.msra.gmra.mrb[0].mxu0 %v3929_v27 }
  0x7c   :  { %1707 = vmatpush1.bf16.msra.mxu0 %v3356_v29  ;;  %1738 = vmatprep.mubr.bf16.mxu0 %v3454_v15  ;;  %v3431_v29 = vld [vmem:[#allocation7 + $0x288] ss:$16 sps:$4 sm:$0xff]  }
  0x7d   :  { %1708 = vmatprep.subr.bf16.mxu0 %v3364_v31  ;;  %1852 = vmatpush1.bf16.msra.mxu1 %v3359_v32  ;;  %v3439_v31 = vld [vmem:[#allocation7 + $0x2ac] ss:$16 sps:$4 sm:$0xff]   ;;  %v3442_v32 = vld [vmem:[#allocation7 + $0x3c4] ss:$16 sps:$4 sm:$0xff]  }
  0x7e   :  { %1853 = vmatprep.subr.bf16.mxu1 %v3367_v34  ;;  %v3440_v34 = vld [vmem:[#allocation7 + $0x3c0] ss:$16 sps:$4 sm:$0xff]  }
  0x80   :  { %1709 = vmatpush1.bf16.msra.mxu0 %v3362_v33  ;;  %v3437_v33 = vld [vmem:[#allocation7 + $0x2a8] ss:$16 sps:$4 sm:$0xff]  }
  0x81   :  { %1710 = vmatprep.subr.bf16.mxu0 %v3370_v35  ;;  %1854 = vmatpush1.bf16.msra.mxu1 %v3365_v36  ;;  %v3445_v35 = vld [vmem:[#allocation7 + $0x2cc] ss:$16 sps:$4 sm:$0xff]   ;;  %v3448_v36 = vld [vmem:[#allocation7 + $0x3e4] ss:$16 sps:$4 sm:$0xff]  }
  0x82   :  { %1855 = vmatprep.subr.bf16.mxu1 %v3373_v38  ;;  %v3446_v38 = vld [vmem:[#allocation7 + $0x3e0] ss:$16 sps:$4 sm:$0xff]  }
  0x84   :  { %1711 = vmatpush1.bf16.msra.mxu0 %v3368_v37  ;;  %v3443_v37 = vld [vmem:[#allocation7 + $0x2c8] ss:$16 sps:$4 sm:$0xff]  }
  0x85   :  { %1712 = vmatprep.subr.bf16.mxu0 %v3376_v39  ;;  %1856 = vmatpush1.bf16.msra.mxu1 %v3371_v40  ;;  %v3451_v39 = vld [vmem:[#allocation7 + $0x2ec] ss:$16 sps:$4 sm:$0xff]   ;;  %v3457_v40 = vld [vmem:[#allocation7 + $0x404] ss:$16 sps:$4 sm:$0xff]  }
  0x86   :  { %1857 = vmatprep.subr.bf16.mxu1 %v3379_v42  ;;  %v3947_v42 = vld [vmem:[#allocation12 + $0x8] ss:$28 sps:$4 sm:$0xff]  }
  0x88   :  { %1713 = vmatpush1.bf16.msra.mxu0 %v3374_v41  ;;  %v3449_v41 = vld [vmem:[#allocation7 + $0x2e8] ss:$16 sps:$4 sm:$0xff]  }
  0x89   :  { %1714 = vmatprep.subr.bf16.mxu0 %v3382_v43  ;;  %1858 = vmatpush1.bf16.msra.mxu1 %v3377_v44  ;;  %v3455_v43 = vld [vmem:[#allocation7 + $0x400] ss:$16 sps:$4 sm:$0xff]   ;;  %v3460_v44 = vld [vmem:[#allocation7 + $0x30c] ss:$16 sps:$4 sm:$0xff]  }
  0x8a   :  { %1859 = vmatprep.subr.bf16.mxu1 %v3385_v46  ;;  %v3458_v46 = vld [vmem:[#allocation7 + $0x308] ss:$16 sps:$4 sm:$0xff]  }
  0x8c   :  { %1715 = vmatpush1.bf16.msra.mxu0 %v3380_v45  ;;  %v3463_v45 = vld [vmem:[#allocation7 + $0x424] ss:$16 sps:$4 sm:$0xff]  }
  0x8d   :  { %1716 = vmatprep.subr.bf16.mxu0 %v3388_v47  ;;  %1860 = vmatpush1.bf16.msra.mxu1 %v3383_v48  ;;  %v3461_v47 = vld [vmem:[#allocation7 + $0x420] ss:$16 sps:$4 sm:$0xff]   ;;  %v3466_v48 = vld [vmem:[#allocation7 + $0x32c] ss:$16 sps:$4 sm:$0xff]  }
  0x8e   :  { %1861 = vmatprep.subr.bf16.mxu1 %v3391_v50  ;;  %v2809_v50 = vld [vmem:[%s4074_s8 + $0x4] sm:$0x1] }
  0x90   :  { %1717 = vmatpush1.bf16.msra.mxu0 %v3386_v49  ;;  %v3469_v49 = vld [vmem:[#allocation7 + $0x444] ss:$16 sps:$4 sm:$0xff]  }
  0x91   :  { %1718 = vmatprep.subr.bf16.mxu0 %v3394_v51  ;;  %1862 = vmatpush1.bf16.msra.mxu1 %v3389_v52  ;;  %v2810_v51 = vld [vmem:[%s4074_s8 + $0x5] sm:$0x1]  ;;  %v166_v52 = vunpack.c.l.bf16 %v2809_v50  ;;  %v3542_v50 = vld [vmem:[#allocation7 + $0x4c8] ss:$16 sps:$4 sm:$0xff]  }
  0x92   :  { %1863 = vmatprep.subr.bf16.mxu1 %v3397_v54  ;;  %v3464_v54 = vld [vmem:[#allocation7 + $0x328] ss:$16 sps:$4 sm:$0xff]  }
  0x93   :  { %v172_v57 = vsel %vm88_vm0, %v166_v52, %v3863_v1  ;;  %v3550_v52 = vld [vmem:[#allocation7 + $0x4ec] ss:$16 sps:$4 sm:$0xff]  }
  0x94   :  { %1719 = vmatpush1.bf16.msra.mxu0 %v3392_v53  ;;  %v187_v53 = vunpack.c.l.bf16 %v2810_v51  ;;  %v179_v60 = vpack.c.bf16 %v3803_v9, %v172_v57  ;;  %v3545_v51 = vld [vmem:[#allocation7 + $0x5e0] ss:$16 sps:$4 sm:$0xff]  }
  0x95   :  { %1720 = vmatprep.subr.bf16.mxu0 %v3400_v55  ;;  %1864 = vmatpush1.bf16.msra.mxu1 %v3395_v59  ;;  %v3467_v55 = vld [vmem:[#allocation7 + $0x440] ss:$16 sps:$4 sm:$0xff]   ;;  %v3475_v59 = vld [vmem:[#allocation7 + $0x464] ss:$16 sps:$4 sm:$0xff]  }
  0x96   :  { %1865 = vmatprep.subr.bf16.mxu1 %v3403_v63  ;;  %v193_v58 = vsel %vm88_vm0, %v187_v53, %v3863_v1  ;;  %181 = vst [vmem:[#allocation12 + $0x10] sm:$0xf] %v179_v60  ;;  %v3473_v63 = vld [vmem:[#allocation7 + $0x460] ss:$16 sps:$4 sm:$0xff]   ;;  %v3604_v53 = vld [vmem:[#allocation9 + $0x4] ss:$8 sps:$4 sm:$0xff]  }
  0x97   :  { %v3479_v1 = vld [vmem:[#allocation7 + $0x480] ss:$16 sps:$4 sm:$0xff]   ;;  %v3559_v60 = vld [vmem:[#allocation7 + $0x52c] ss:$16 sps:$4 sm:$0xff]  }
  0x98   :  { %1721 = vmatpush1.bf16.msra.mxu0 %v3398_v61  ;;  %v200_v61 = vpack.c.bf16 %v3803_v9, %v193_v58  ;;  %v3602_v57 = vld [vmem:[#allocation9] ss:$8 sps:$4 sm:$0xff]   ;;  %v3607_v58 = vld [vmem:[#allocation9 + $0x14] ss:$8 sps:$4 sm:$0xff]  }
  0x99   :  { %1722 = vmatprep.subr.bf16.mxu0 %v3406_v4  ;;  %1866 = vmatpush1.bf16.msra.mxu1 %v3401_v6  ;;  %v3476_v4 = vld [vmem:[#allocation7 + $0x368] ss:$16 sps:$4 sm:$0xff]   ;;  %v3487_v6 = vld [vmem:[#allocation7 + $0x4a4] ss:$16 sps:$4 sm:$0xff]  }
  0x9a   :  { %1878 = vmatprep.subr.bf16.mxu1 %v3409_v8  ;;  %202 = vst [vmem:[#allocation12 + $0x14] sm:$0xf] %v200_v61  ;;  %v3482_v8 = vld [vmem:[#allocation7 + $0x388] ss:$16 sps:$4 sm:$0xff]  }
  0x9b   :  { %v3605_v61 = vld [vmem:[#allocation9 + $0x10] ss:$8 sps:$4 sm:$0xff]  }
  0x9c   :  { %1723 = vmatpush1.bf16.msra.mxu0 %v3404_v7  ;;  %1868 = vmatmul.mubr.bf16.vlgmr.msra.gmra.mrb[4].mxu1 %v3929_v27  ;;  %v3436_v27 = vld [vmem:[#allocation7 + $0x3a4] ss:$16 sps:$4 sm:$0xff]  }
  0x9d   :  { %1724 = vmatprep.subr.bf16.mxu0 %v3412_v10  ;;  %1879 = vmatpush1.bf16.msra.mxu1 %v3407_v11  ;;  %v3485_v10 = vld [vmem:[#allocation7 + $0x4a0] ss:$16 sps:$4 sm:$0xff]   ;;  %v3490_v11 = vld [vmem:[#allocation7 + $0x3ac] ss:$16 sps:$4 sm:$0xff]  }
  0x9e   :  { %1880 = vmatprep.subr.bf16.mxu1 %v3415_v13  ;;  %1910 = vmatprep.mubr.bf16.mxu1 %v3454_v15  ;;  %v3488_v13 = vld [vmem:[#allocation7 + $0x3a8] ss:$16 sps:$4 sm:$0xff]   ;;  %v3496_v15 = vld [vmem:[#allocation7 + $0x3cc] ss:$16 sps:$4 sm:$0xff]  }
  0xa0   :  { %1725 = vmatpush1.bf16.msra.mxu0 %v3410_v12  ;;  %v3493_v12 = vld [vmem:[#allocation7 + $0x4c4] ss:$16 sps:$4 sm:$0xff]  }
  0xa1   :  { %1726 = vmatprep.subr.bf16.mxu0 %v3418_v14  ;;  %1881 = vmatpush1.bf16.msra.mxu1 %v3413_v16  ;;  %v3553_v7 = vld [vmem:[#allocation12 + $0x14] ss:$28 sps:$4 sm:$0xff]  }
  0xa2   :  { %1882 = vmatprep.subr.bf16.mxu1 %v3421_v18  ;;  %v3491_v14 = vld [vmem:[#allocation7 + $0x4c0] ss:$16 sps:$4 sm:$0xff]   ;;  %v3499_v16 = vld [vmem:[#allocation7 + $0x4e4] ss:$16 sps:$4 sm:$0xff]  }
  0xa3   :  { %v3497_v18 = vld [vmem:[#allocation7 + $0x4e0] ss:$16 sps:$4 sm:$0xff]  }
  0xa4   :  { %1727 = vmatpush1.bf16.msra.mxu0 %v3416_v17  ;;  %v3494_v17 = vld [vmem:[#allocation7 + $0x3c8] ss:$16 sps:$4 sm:$0xff]  }
  0xa5   :  { %1728 = vmatprep.subr.bf16.mxu0 %v3424_v19  ;;  %1883 = vmatpush1.bf16.msra.mxu1 %v3419_v20  ;;  %v3502_v19 = vld [vmem:[#allocation7 + $0x3ec] ss:$16 sps:$4 sm:$0xff]   ;;  %v3505_v20 = vld [vmem:[#allocation7 + $0x504] ss:$16 sps:$4 sm:$0xff]  }
  0xa6   :  { %1884 = vmatprep.subr.bf16.mxu1 %v3427_v22  ;;  %v3503_v22 = vld [vmem:[#allocation7 + $0x500] ss:$16 sps:$4 sm:$0xff]  }
  0xa8   :  { %1729 = vmatpush1.bf16.msra.mxu0 %v3422_v21  ;;  %v3500_v21 = vld [vmem:[#allocation7 + $0x3e8] ss:$16 sps:$4 sm:$0xff]  }
  0xa9   :  { %1730 = vmatprep.subr.bf16.mxu0 %v3430_v23  ;;  %1885 = vmatpush1.bf16.msra.mxu1 %v3425_v24  ;;  %v3508_v23 = vld [vmem:[#allocation7 + $0x40c] ss:$16 sps:$4 sm:$0xff]   ;;  %v3511_v24 = vld [vmem:[#allocation7 + $0x524] ss:$16 sps:$4 sm:$0xff]  }
  0xaa   :  { %1886 = vmatprep.subr.bf16.mxu1 %v3433_v26  ;;  %v3509_v26 = vld [vmem:[#allocation7 + $0x520] ss:$16 sps:$4 sm:$0xff]  }
  0xac   :  { %1731 = vmatpush1.bf16.msra.mxu0 %v3428_v25  ;;  %v3506_v25 = vld [vmem:[#allocation7 + $0x408] ss:$16 sps:$4 sm:$0xff]  }
  0xad   :  { %1732 = vmatprep.subr.bf16.mxu0 %v3436_v27  ;;  %1887 = vmatpush1.bf16.msra.mxu1 %v3431_v29  ;;  %v3514_v27 = vld [vmem:[#allocation7 + $0x42c] ss:$16 sps:$4 sm:$0xff]   ;;  %v3517_v29 = vld [vmem:[#allocation7 + $0x544] ss:$16 sps:$4 sm:$0xff]  }
  0xae   :  { %1888 = vmatprep.subr.bf16.mxu1 %v3439_v31  ;;  %v3515_v31 = vld [vmem:[#allocation7 + $0x540] ss:$16 sps:$4 sm:$0xff]  }
  0xb0   :  { %1733 = vmatpush1.bf16.msra.mxu0 %v3434_v30  ;;  %v3512_v30 = vld [vmem:[#allocation7 + $0x428] ss:$16 sps:$4 sm:$0xff]  }
  0xb1   :  { %1734 = vmatprep.subr.bf16.mxu0 %v3442_v32  ;;  %1889 = vmatpush1.bf16.msra.mxu1 %v3437_v33  ;;  %v3520_v32 = vld [vmem:[#allocation7 + $0x44c] ss:$16 sps:$4 sm:$0xff]   ;;  %v3523_v33 = vld [vmem:[#allocation7 + $0x564] ss:$16 sps:$4 sm:$0xff]  }
  0xb2   :  { %1890 = vmatprep.subr.bf16.mxu1 %v3445_v35  ;;  %v3521_v35 = vld [vmem:[#allocation7 + $0x560] ss:$16 sps:$4 sm:$0xff]  }
  0xb4   :  { %1735 = vmatpush1.bf16.msra.mxu0 %v3440_v34  ;;  %v3518_v34 = vld [vmem:[#allocation7 + $0x448] ss:$16 sps:$4 sm:$0xff]  }
  0xb5   :  { %1736 = vmatprep.subr.bf16.mxu0 %v3448_v36  ;;  %1891 = vmatpush1.bf16.msra.mxu1 %v3443_v37  ;;  %v3526_v36 = vld [vmem:[#allocation7 + $0x46c] ss:$16 sps:$4 sm:$0xff]   ;;  %v3524_v37 = vld [vmem:[#allocation7 + $0x468] ss:$16 sps:$4 sm:$0xff]  }
  0xb6   :  { %1892 = vmatprep.subr.bf16.mxu1 %v3451_v39  ;;  %v3527_v39 = vld [vmem:[#allocation7 + $0x580] ss:$16 sps:$4 sm:$0xff]  }
  0xb8   :  { %1737 = vmatpush1.bf16.msra.mxu0 %v3446_v38  ;;  %v3529_v38 = vld [vmem:[#allocation7 + $0x584] ss:$16 sps:$4 sm:$0xff]  }
  0xb9   :  { %1749 = vmatprep.subr.bf16.mxu0 %v3457_v40  ;;  %1893 = vmatpush1.bf16.msra.mxu1 %v3449_v41  ;;  %v3532_v40 = vld [vmem:[#allocation7 + $0x48c] ss:$16 sps:$4 sm:$0xff]   ;;  %v3535_v41 = vld [vmem:[#allocation7 + $0x5a4] ss:$16 sps:$4 sm:$0xff]  }
  0xba   :  { %1894 = vmatprep.subr.bf16.mxu1 %v3460_v44  ;;  %v3538_v44 = vld [vmem:[#allocation7 + $0x4ac] ss:$16 sps:$4 sm:$0xff]  }
  0xbb   :  { %1739 = vmatmul.mubr.bf16.vlgmr.msra.gmra.mrb[0].mxu0 %v3947_v42 }
  0xbc   :  { %1750 = vmatpush1.bf16.msra.mxu0 %v3455_v43  ;;  %1781 = vmatprep.mubr.bf16.mxu0 %v3553_v7  ;;  %v3533_v43 = vld [vmem:[#allocation7 + $0x5a0] ss:$16 sps:$4 sm:$0xff]  }
  0xbd   :  { %1751 = vmatprep.subr.bf16.mxu0 %v3463_v45  ;;  %1895 = vmatpush1.bf16.msra.mxu1 %v3458_v46  ;;  %v3541_v45 = vld [vmem:[#allocation7 + $0x5c4] ss:$16 sps:$4 sm:$0xff]   ;;  %v3536_v46 = vld [vmem:[#allocation7 + $0x4a8] ss:$16 sps:$4 sm:$0xff]  }
  0xbe   :  { %1896 = vmatprep.subr.bf16.mxu1 %v3466_v48  ;;  %v3544_v48 = vld [vmem:[#allocation7 + $0x4cc] ss:$16 sps:$4 sm:$0xff]  }
  0xc0   :  { %1752 = vmatpush1.bf16.msra.mxu0 %v3461_v47  ;;  %v3539_v47 = vld [vmem:[#allocation7 + $0x5c0] ss:$16 sps:$4 sm:$0xff]  }
  0xc1   :  { %1753 = vmatprep.subr.bf16.mxu0 %v3469_v49  ;;  %1897 = vmatpush1.bf16.msra.mxu1 %v3464_v54  ;;  %v3547_v49 = vld [vmem:[#allocation7 + $0x5e4] ss:$16 sps:$4 sm:$0xff]   ;;  %v3548_v54 = vld [vmem:[#allocation7 + $0x4e8] ss:$16 sps:$4 sm:$0xff]  }
  0xc2   :  { %1898 = vmatprep.subr.bf16.mxu1 %v3472_v56  ;;  %v3556_v56 = vld [vmem:[#allocation7 + $0x50c] ss:$16 sps:$4 sm:$0xff]  }
  0xc4   :  { %1754 = vmatpush1.bf16.msra.mxu0 %v3467_v55  ;;  %v3965_v55 = vld [vmem:[#allocation12 + $0x10] ss:$28 sps:$4 sm:$0xff]  }
  0xc5   :  { %1755 = vmatprep.subr.bf16.mxu0 %v3475_v59  ;;  %1899 = vmatpush1.bf16.msra.mxu1 %v3470_v62  ;;  %v3554_v59 = vld [vmem:[#allocation7 + $0x508] ss:$16 sps:$4 sm:$0xff]   ;;  %v3610_v62 = vld [vmem:[#allocation9 + $0x24] ss:$8 sps:$4 sm:$0xff]  }
  0xc6   :  { %1900 = vmatprep.subr.bf16.mxu1 %v3478_v0  ;;  %v3562_v0 = vld [vmem:[#allocation7 + $0x54c] ss:$16 sps:$4 sm:$0xff]  }
  0xc8   :  { %1756 = vmatpush1.bf16.msra.mxu0 %v3473_v63  ;;  %v3557_v63 = vld [vmem:[#allocation7 + $0x528] ss:$16 sps:$4 sm:$0xff]  }
  0xc9   :  { %1757 = vmatprep.subr.bf16.mxu0 %v3481_v2  ;;  %1901 = vmatpush1.bf16.msra.mxu1 %v3476_v4  ;;  %v3608_v2 = vld [vmem:[#allocation9 + $0x20] ss:$8 sps:$4 sm:$0xff]   ;;  %v3613_v4 = vld [vmem:[#allocation9 + $0x34] ss:$8 sps:$4 sm:$0xff]  }
  0xca   :  { %1902 = vmatprep.subr.bf16.mxu1 %v3484_v5  ;;  %v3565_v5 = vld [vmem:[#allocation7 + $0x56c] ss:$16 sps:$4 sm:$0xff]  }
  0xcc   :  { %1758 = vmatpush1.bf16.msra.mxu0 %v3479_v1  ;;  %v3560_v1 = vld [vmem:[#allocation7 + $0x548] ss:$16 sps:$4 sm:$0xff]  }
  0xcd   :  { %1759 = vmatprep.subr.bf16.mxu0 %v3487_v6  ;;  %1903 = vmatpush1.bf16.msra.mxu1 %v3482_v8  ;;  %v3611_v6 = vld [vmem:[#allocation9 + $0x30] ss:$8 sps:$4 sm:$0xff]  }
  0xce   :  { %1904 = vmatprep.subr.bf16.mxu1 %v3490_v11  ;;  %v3563_v8 = vld [vmem:[#allocation7 + $0x568] ss:$16 sps:$4 sm:$0xff]  }
  0xcf   :  { %v3614_v11 = vld [vmem:[#allocation9 + $0x40] ss:$8 sps:$4 sm:$0xff]  }
  0xd0   :  { %1760 = vmatpush1.bf16.msra.mxu0 %v3485_v10  ;;  %v3568_v10 = vld [vmem:[#allocation7 + $0x58c] ss:$16 sps:$4 sm:$0xff]  }
  0xd1   :  { %1761 = vmatprep.subr.bf16.mxu0 %v3493_v12  ;;  %1905 = vmatpush1.bf16.msra.mxu1 %v3488_v13  ;;  %v3619_v12 = vld [vmem:[#allocation9 + $0x54] ss:$8 sps:$4 sm:$0xff]   ;;  %v3566_v13 = vld [vmem:[#allocation7 + $0x588] ss:$16 sps:$4 sm:$0xff]  }
  0xd2   :  { %1906 = vmatprep.subr.bf16.mxu1 %v3496_v15  ;;  %v3617_v15 = vld [vmem:[#allocation9 + $0x50] ss:$8 sps:$4 sm:$0xff]  }
  0xd4   :  { %1762 = vmatpush1.bf16.msra.mxu0 %v3491_v14  ;;  %v3571_v14 = vld [vmem:[#allocation7 + $0x5ac] ss:$16 sps:$4 sm:$0xff]  }
  0xd5   :  { %1763 = vmatprep.subr.bf16.mxu0 %v3499_v16  ;;  %1907 = vmatpush1.bf16.msra.mxu1 %v3494_v17  ;;  %v3622_v16 = vld [vmem:[#allocation9 + $0x64] ss:$8 sps:$4 sm:$0xff]   ;;  %v3569_v17 = vld [vmem:[#allocation7 + $0x5a8] ss:$16 sps:$4 sm:$0xff]  }
  0xd6   :  { %1908 = vmatprep.subr.bf16.mxu1 %v3502_v19  ;;  %v3620_v19 = vld [vmem:[#allocation9 + $0x60] ss:$8 sps:$4 sm:$0xff]  }
  0xd8   :  { %1764 = vmatpush1.bf16.msra.mxu0 %v3497_v18  ;;  %v3574_v18 = vld [vmem:[#allocation7 + $0x5cc] ss:$16 sps:$4 sm:$0xff]  }
  0xd9   :  { %1765 = vmatprep.subr.bf16.mxu0 %v3505_v20  ;;  %1909 = vmatpush1.bf16.msra.mxu1 %v3500_v21  ;;  %v3625_v20 = vld [vmem:[#allocation9 + $0x74] ss:$8 sps:$4 sm:$0xff]   ;;  %v3572_v21 = vld [vmem:[#allocation7 + $0x5c8] ss:$16 sps:$4 sm:$0xff]  }
  0xda   :  { %1921 = vmatprep.subr.bf16.mxu1 %v3508_v23  ;;  %v3623_v23 = vld [vmem:[#allocation9 + $0x70] ss:$8 sps:$4 sm:$0xff]  }
  0xdc   :  { %1766 = vmatpush1.bf16.msra.mxu0 %v3503_v22  ;;  %1911 = vmatmul.mubr.bf16.vlgmr.msra.gmra.mrb[4].mxu1 %v3947_v42  ;;  %v3530_v42 = vld [vmem:[#allocation7 + $0x488] ss:$16 sps:$4 sm:$0xff]   ;;  %v3577_v22 = vld [vmem:[#allocation7 + $0x5ec] ss:$16 sps:$4 sm:$0xff]  }
  0xdd   :  { %1767 = vmatprep.subr.bf16.mxu0 %v3511_v24  ;;  %1922 = vmatpush1.bf16.msra.mxu1 %v3506_v25  ;;  %v3628_v24 = vld [vmem:[#allocation9 + $0x84] ss:$8 sps:$4 sm:$0xff]   ;;  %v3575_v25 = vld [vmem:[#allocation7 + $0x5e8] ss:$16 sps:$4 sm:$0xff]  }
  0xde   :  { %1953 = vmatprep.mubr.bf16.mxu1 %v3553_v7  ;;  %1923 = vmatprep.subr.bf16.mxu1 %v3514_v27  ;;  %v3616_v7 = vld [vmem:[#allocation9 + $0x44] ss:$8 sps:$4 sm:$0xff]   ;;  %v3626_v27 = vld [vmem:[#allocation9 + $0x80] ss:$8 sps:$4 sm:$0xff]  }
  0xe0   :  { %1768 = vmatpush1.bf16.msra.mxu0 %v3509_v26  ;;  %v3580_v26 = vld [vmem:[#allocation7 + $0x60c] ss:$16 sps:$4 sm:$0xff]  }
  0xe1   :  { %1769 = vmatprep.subr.bf16.mxu0 %v3517_v29  ;;  %1924 = vmatpush1.bf16.msra.mxu1 %v3512_v30  ;;  %v3631_v29 = vld [vmem:[#allocation9 + $0x94] ss:$8 sps:$4 sm:$0xff]   ;;  %v3578_v30 = vld [vmem:[#allocation7 + $0x608] ss:$16 sps:$4 sm:$0xff]  }
  0xe2   :  { %1925 = vmatprep.subr.bf16.mxu1 %v3520_v32  ;;  %v3629_v32 = vld [vmem:[#allocation9 + $0x90] ss:$8 sps:$4 sm:$0xff]  }
  0xe4   :  { %1770 = vmatpush1.bf16.msra.mxu0 %v3515_v31  ;;  %v3583_v31 = vld [vmem:[#allocation7 + $0x62c] ss:$16 sps:$4 sm:$0xff]  }
  0xe5   :  { %1771 = vmatprep.subr.bf16.mxu0 %v3523_v33  ;;  %1926 = vmatpush1.bf16.msra.mxu1 %v3518_v34  ;;  %v3634_v33 = vld [vmem:[#allocation9 + $0xa4] ss:$8 sps:$4 sm:$0xff]   ;;  %v3581_v34 = vld [vmem:[#allocation7 + $0x628] ss:$16 sps:$4 sm:$0xff]  }
  0xe6   :  { %1927 = vmatprep.subr.bf16.mxu1 %v3526_v36  ;;  %v3632_v36 = vld [vmem:[#allocation9 + $0xa0] ss:$8 sps:$4 sm:$0xff]  }
  0xe8   :  { %1772 = vmatpush1.bf16.msra.mxu0 %v3521_v35  ;;  %v3586_v35 = vld [vmem:[#allocation7 + $0x64c] ss:$16 sps:$4 sm:$0xff]  }
  0xe9   :  { %1773 = vmatprep.subr.bf16.mxu0 %v3529_v38  ;;  %1928 = vmatpush1.bf16.msra.mxu1 %v3524_v37  ;;  %v3637_v37 = vld [vmem:[#allocation9 + $0xb4] ss:$8 sps:$4 sm:$0xff]   ;;  %v3584_v38 = vld [vmem:[#allocation7 + $0x648] ss:$16 sps:$4 sm:$0xff]  }
  0xea   :  { %1929 = vmatprep.subr.bf16.mxu1 %v3532_v40  ;;  %v3635_v40 = vld [vmem:[#allocation9 + $0xb0] ss:$8 sps:$4 sm:$0xff]  }
  0xec   :  { %1774 = vmatpush1.bf16.msra.mxu0 %v3527_v39  ;;  %v3589_v39 = vld [vmem:[#allocation7 + $0x66c] ss:$16 sps:$4 sm:$0xff]  }
  0xed   :  { %1775 = vmatprep.subr.bf16.mxu0 %v3535_v41  ;;  %1930 = vmatpush1.bf16.msra.mxu1 %v3530_v42  ;;  %v3640_v41 = vld [vmem:[#allocation9 + $0xc4] ss:$8 sps:$4 sm:$0xff]   ;;  %v3587_v42 = vld [vmem:[#allocation7 + $0x668] ss:$16 sps:$4 sm:$0xff]  }
  0xee   :  { %1931 = vmatprep.subr.bf16.mxu1 %v3538_v44  ;;  %v3590_v44 = vld [vmem:[#allocation7 + $0x688] ss:$16 sps:$4 sm:$0xff]  }
  0xf0   :  { %1776 = vmatpush1.bf16.msra.mxu0 %v3533_v43  ;;  %v3592_v43 = vld [vmem:[#allocation7 + $0x68c] ss:$16 sps:$4 sm:$0xff]  }
  0xf1   :  { %1777 = vmatprep.subr.bf16.mxu0 %v3541_v45  ;;  %1932 = vmatpush1.bf16.msra.mxu1 %v3536_v46  ;;  %v3595_v45 = vld [vmem:[#allocation7 + $0x6ac] ss:$16 sps:$4 sm:$0xff]   ;;  %v3593_v46 = vld [vmem:[#allocation7 + $0x6a8] ss:$16 sps:$4 sm:$0xff]  }
  0xf2   :  { %1933 = vmatprep.subr.bf16.mxu1 %v3544_v48 }
  0xf4   :  { %1778 = vmatpush1.bf16.msra.mxu0 %v3539_v47  ;;  %v3598_v47 = vld [vmem:[#allocation7 + $0x6cc] ss:$16 sps:$4 sm:$0xff]  }
  0xf5   :  { %1779 = vmatprep.subr.bf16.mxu0 %v3547_v49  ;;  %1934 = vmatpush1.bf16.msra.mxu1 %v3542_v50 }
  0xf6   :  { %1935 = vmatprep.subr.bf16.mxu1 %v3550_v52 }
  0xf8   :  { %1780 = vmatpush1.bf16.msra.mxu0 %v3545_v51  ;;  %v3596_v51 = vld [vmem:[#allocation7 + $0x6c8] ss:$16 sps:$4 sm:$0xff]  }
  0xf9   :  { %2415 = vmatprep.subr.bf16.mxu0 %v3604_v53  ;;  %1936 = vmatpush1.bf16.msra.mxu1 %v3548_v54  ;;  %v3601_v53 = vld [vmem:[#allocation7 + $0x6ec] ss:$16 sps:$4 sm:$0xff]   ;;  %v3599_v54 = vld [vmem:[#allocation7 + $0x6e8] ss:$16 sps:$4 sm:$0xff]  }
  0xfa   :  { %1937 = vmatprep.subr.bf16.mxu1 %v3556_v56  ;;  %v3643_v56 = vld [vmem:[#allocation9 + $0xd4] ss:$8 sps:$4 sm:$0xff]  }
  0xfb   :  { %1782 = vmatmul.mubr.bf16.vlgmr.msra.gmra.mrb[0].mxu0 %v3965_v55 }
  0xfc   :  { %2416 = vmatpush1.bf16.msra.mxu0 %v3602_v57  ;;  %v3641_v57 = vld [vmem:[#allocation9 + $0xd0] ss:$8 sps:$4 sm:$0xff]  }
  0xfd   :  { %2417 = vmatprep.subr.bf16.mxu0 %v3607_v58  ;;  %1938 = vmatpush1.bf16.msra.mxu1 %v3554_v59  ;;  %v3646_v58 = vld [vmem:[#allocation9 + $0xe4] ss:$8 sps:$4 sm:$0xff]   ;;  %v3644_v59 = vld [vmem:[#allocation9 + $0xe0] ss:$8 sps:$4 sm:$0xff]  }
  0xfe   :  { %1939 = vmatprep.subr.bf16.mxu1 %v3559_v60  ;;  %v3647_v60 = vld [vmem:[#allocation9 + $0xf0] ss:$8 sps:$4 sm:$0xff]  }
 0x100   :  { %2418 = vmatpush1.bf16.msra.mxu0 %v3605_v61  ;;  %v3649_v61 = vld [vmem:[#allocation9 + $0xf4] ss:$8 sps:$4 sm:$0xff]  }
 0x101   :  { %2419 = vmatprep.subr.bf16.mxu0 %v3610_v62  ;;  %1940 = vmatpush1.bf16.msra.mxu1 %v3557_v63  ;;  %v3652_v62 = vld [vmem:[#allocation9 + $0x104] ss:$8 sps:$4 sm:$0xff]  }
 0x102   :  { %1941 = vmatprep.subr.bf16.mxu1 %v3562_v0  ;;  %v3698_v63 = vld [vmem:[%s4070_s4 + $0x40] sm:$0xff]  }
 0x103   :  { %v3699_v0 = vld [vmem:[%s4070_s4] sm:$0xff]  }
 0x104   :  { %2420 = vmatpush1.bf16.msra.mxu0 %v3608_v2  ;;  %v3700_v2 = vld [vmem:[%s4070_s4 + $0x48] sm:$0xff]  }
 0x105   :  { %2421 = vmatprep.subr.bf16.mxu0 %v3613_v4  ;;  %1942 = vmatpush1.bf16.msra.mxu1 %v3560_v1  ;;  %v3701_v4 = vld [vmem:[%s4070_s4 + $0x8] sm:$0xff]   ;;  %v3702_v1 = vld [vmem:[%s4070_s4 + $0x50] sm:$0xff]  }
 0x106   :  { %1943 = vmatprep.subr.bf16.mxu1 %v3565_v5  ;;  %v3703_v5 = vld [vmem:[%s4070_s4 + $0x10] sm:$0xff]  }
 0x108   :  { %2422 = vmatpush1.bf16.msra.mxu0 %v3611_v6  ;;  %v3704_v6 = vld [vmem:[%s4070_s4 + $0x58] sm:$0xff]  }
 0x109   :  { %2423 = vmatprep.subr.bf16.mxu0 %v3616_v7  ;;  %1944 = vmatpush1.bf16.msra.mxu1 %v3563_v8  ;;  %v3705_v7 = vld [vmem:[%s4070_s4 + $0x18] sm:$0xff]   ;;  %v3706_v8 = vld [vmem:[%s4070_s4 + $0x60] sm:$0xff]  }
 0x10a   :  { %1945 = vmatprep.subr.bf16.mxu1 %v3568_v10  ;;  %v3707_v10 = vld [vmem:[%s4070_s4 + $0x20] sm:$0xff]  }
 0x10c   :  { %2424 = vmatpush1.bf16.msra.mxu0 %v3614_v11  ;;  %v3708_v11 = vld [vmem:[%s4070_s4 + $0x68] sm:$0xff]  }
 0x10d   :  { %2425 = vmatprep.subr.bf16.mxu0 %v3619_v12  ;;  %1946 = vmatpush1.bf16.msra.mxu1 %v3566_v13  ;;  %v489_v12 = vsub.s32 0, %v3904_v28  ;;  %v4009_v13 = vld [vmem:[%s4067_s1] sm:$0xf] }
 0x10e   :  { %1947 = vmatprep.subr.bf16.mxu1 %v3571_v14  ;;  %v493_v14 = vsub.s32 1, %v3904_v28 }
 0x110   :  { %2426 = vmatpush1.bf16.msra.mxu0 %v3617_v15  ;;  %v490_v15 = vrot.slane %v4009_v13, %v489_v12 }
 0x111   :  { %2427 = vmatprep.subr.bf16.mxu0 %v3622_v16  ;;  %1948 = vmatpush1.bf16.msra.mxu1 %v3569_v17  ;;  %v494_v16 = vrot.slane %v4009_v13, %v493_v14 }
 0x112   :  { %1949 = vmatprep.subr.bf16.mxu1 %v3574_v18 }
 0x114   :  { %2428 = vmatpush1.bf16.msra.mxu0 %v3620_v19 }
 0x115   :  { %2429 = vmatprep.subr.bf16.mxu0 %v3625_v20  ;;  %1950 = vmatpush1.bf16.msra.mxu1 %v3572_v21 }
 0x116   :  { %1951 = vmatprep.subr.bf16.mxu1 %v3577_v22 }
 0x118   :  { %2430 = vmatpush1.bf16.msra.mxu0 %v3623_v23 }
 0x119   :  { %2431 = vmatprep.subr.bf16.mxu0 %v3628_v24  ;;  %1952 = vmatpush1.bf16.msra.mxu1 %v3575_v25 }
 0x11a   :  { %1964 = vmatprep.subr.bf16.mxu1 %v3580_v26 }
 0x11c   :  { %2432 = vmatpush1.bf16.msra.mxu0 %v3626_v27  ;;  %1954 = vmatmul.mubr.bf16.vlgmr.msra.gmra.mrb[4].mxu1 %v3965_v55  ;;  %v3722_v55 = vld [vmem:[#allocation12 + $0x18] ss:$28 sps:$4 sm:$0xff]  }
 0x11d   :  { %2433 = vmatprep.subr.bf16.mxu0 %v3631_v29  ;;  %1965 = vmatpush1.bf16.msra.mxu1 %v3578_v30 }
 0x11e   :  { %1996 = vmatprep.mubr.bf16.mxu1 %v3802_v3  ;;  %1966 = vmatprep.subr.bf16.mxu1 %v3583_v31  ;;  %v3638_v3 = vld [vmem:[#allocation9 + $0xc0] ss:$8 sps:$4 sm:$0xff]  }
 0x120   :  { %2434 = vmatpush1.bf16.msra.mxu0 %v3629_v32 }
 0x121   :  { %2435 = vmatprep.subr.bf16.mxu0 %v3634_v33  ;;  %1967 = vmatpush1.bf16.msra.mxu1 %v3581_v34 }
 0x122   :  { %1968 = vmatprep.subr.bf16.mxu1 %v3586_v35 }
 0x124   :  { %2436 = vmatpush1.bf16.msra.mxu0 %v3632_v36  ;;  %v3650_v36 = vld [vmem:[#allocation9 + $0x100] ss:$8 sps:$4 sm:$0xff]  }
 0x125   :  { %2437 = vmatprep.subr.bf16.mxu0 %v3637_v37  ;;  %1969 = vmatpush1.bf16.msra.mxu1 %v3584_v38  ;;  %v3655_v37 = vld [vmem:[#allocation9 + $0x114] ss:$8 sps:$4 sm:$0xff]   ;;  %v3653_v38 = vld [vmem:[#allocation9 + $0x110] ss:$8 sps:$4 sm:$0xff]  }
 0x126   :  { %1970 = vmatprep.subr.bf16.mxu1 %v3589_v39  ;;  %v3658_v39 = vld [vmem:[#allocation9 + $0x124] ss:$8 sps:$4 sm:$0xff]  }
 0x128   :  { %2438 = vmatpush1.bf16.msra.mxu0 %v3635_v40  ;;  %v3656_v40 = vld [vmem:[#allocation9 + $0x120] ss:$8 sps:$4 sm:$0xff]  }
 0x129   :  { %2439 = vmatprep.subr.bf16.mxu0 %v3640_v41  ;;  %1971 = vmatpush1.bf16.msra.mxu1 %v3587_v42  ;;  %v3661_v41 = vld [vmem:[#allocation9 + $0x134] ss:$8 sps:$4 sm:$0xff]   ;;  %v3659_v42 = vld [vmem:[#allocation9 + $0x130] ss:$8 sps:$4 sm:$0xff]  }
 0x12a   :  { %1972 = vmatprep.subr.bf16.mxu1 %v3592_v43  ;;  %v3664_v43 = vld [vmem:[#allocation9 + $0x144] ss:$8 sps:$4 sm:$0xff]  }
 0x12c   :  { %2440 = vmatpush1.bf16.msra.mxu0 %v3638_v3  ;;  %v3662_v3 = vld [vmem:[#allocation9 + $0x140] ss:$8 sps:$4 sm:$0xff]  }
 0x12d   :  { %1973 = vmatpush1.bf16.msra.mxu1 %v3590_v44  ;;  %2441 = vmatprep.subr.bf16.mxu0 %v3643_v56  ;;  %v3667_v44 = vld [vmem:[#allocation9 + $0x154] ss:$8 sps:$4 sm:$0xff]  }
 0x12e   :  { %1974 = vmatprep.subr.bf16.mxu1 %v3595_v45  ;;  %v3665_v45 = vld [vmem:[#allocation9 + $0x150] ss:$8 sps:$4 sm:$0xff]   ;;  %v3685_v56 = vld [vmem:[#allocation9 + $0x1b4] ss:$8 sps:$4 sm:$0xff]  }
 0x12f   :  { %v1826_v48 = vpop.f32.mrb[0].mxu1 }
 0x130   :  { %v1828_v49 = vpop.f32.mrb[1].mxu1  ;;  %2442 = vmatpush1.bf16.msra.mxu0 %v3641_v57  ;;  %v3683_v57 = vld [vmem:[#allocation9 + $0x1b0] ss:$8 sps:$4 sm:$0xff]  }
 0x131   :  { %v3970_v50 = vpop.f32.mrb[2].mxu1  ;;  %1975 = vmatpush1.bf16.msra.mxu1 %v3593_v46  ;;  %2443 = vmatprep.subr.bf16.mxu0 %v3646_v58  ;;  %v3670_v46 = vld [vmem:[#allocation9 + $0x164] ss:$8 sps:$4 sm:$0xff]  }
 0x132   :  { %v1832_v52 = vpop.f32.mrb[3].mxu1  ;;  %1976 = vmatprep.subr.bf16.mxu1 %v3598_v47  ;;  %v3668_v47 = vld [vmem:[#allocation9 + $0x160] ss:$8 sps:$4 sm:$0xff]   ;;  %v3688_v58 = vld [vmem:[#allocation9 + $0x1c4] ss:$8 sps:$4 sm:$0xff]  }
 0x134   :  { %2444 = vmatpush1.bf16.msra.mxu0 %v3644_v59  ;;  %v3686_v59 = vld [vmem:[#allocation9 + $0x1c0] ss:$8 sps:$4 sm:$0xff]  }
 0x135   :  { %1977 = vmatpush1.bf16.msra.mxu1 %v3596_v51  ;;  %2445 = vmatprep.subr.bf16.mxu0 %v3649_v61  ;;  %v3674_v51 = vld [vmem:[#allocation9 + $0x180] ss:$8 sps:$4 sm:$0xff]   ;;  %v497_v61 = vsub.s32 2, %v3904_v28 }
 0x136   :  { %1978 = vmatprep.subr.bf16.mxu1 %v3601_v53  ;;  %v3677_v53 = vld [vmem:[#allocation9 + $0x190] ss:$8 sps:$4 sm:$0xff]  }
 0x138   :  { %2446 = vmatpush1.bf16.msra.mxu0 %v3647_v60  ;;  %v3691_v60 = vld [vmem:[#allocation9 + $0x1d4] ss:$8 sps:$4 sm:$0xff]  }
 0x139   :  { %1979 = vmatpush1.bf16.msra.mxu1 %v3599_v54  ;;  %2458 = vmatprep.subr.bf16.mxu0 %v3652_v62  ;;  %v3682_v54 = vld [vmem:[#allocation9 + $0x1a4] ss:$8 sps:$4 sm:$0xff]   ;;  %v501_v62 = vsub.s32 3, %v3904_v28 }
 0x13a   :  { %3153 = vmatprep.subr.bf16.mxu1 %v3698_v63  ;;  %v3689_v63 = vld [vmem:[#allocation9 + $0x1d0] ss:$8 sps:$4 sm:$0xff]   ;;  %v3715_v28 = vld [vmem:[#allocation11 + $0x8] sm:$0xff]  }
 0x13c   :  { %1997 = vmatmul.mubr.bf16.vlgmr.msra.gmra.mrb[4].mxu1 %v3722_v55  ;;  %v3680_v55 = vld [vmem:[#allocation9 + $0x1a0] ss:$8 sps:$4 sm:$0xff]  }
 0x13d   :  { %3154 = vmatpush3.bf16.msra.mxu1 %v3699_v0  ;;  %v3694_v0 = vld [vmem:[#allocation9 + $0x1e4] ss:$8 sps:$4 sm:$0xff]  }
 0x13e   :  { %3155 = vmatprep.subr.bf16.mxu1 %v3700_v2  ;;  %v498_v2 = vrot.slane %v4009_v13, %v497_v61 }
 0x141   :  { %3156 = vmatpush3.bf16.msra.mxu1 %v3701_v4  ;;  %v502_v4 = vrot.slane %v4009_v13, %v501_v62 }
 0x142   :  { %3157 = vmatprep.subr.bf16.mxu1 %v3702_v1  ;;  %v3692_v1 = vld [vmem:[#allocation9 + $0x1e0] ss:$8 sps:$4 sm:$0xff]  }
 0x145   :  { %3158 = vmatpush3.bf16.msra.mxu1 %v3703_v5 }
 0x146   :  { %3159 = vmatprep.subr.bf16.mxu1 %v3704_v6  ;;  %v3697_v6 = vld [vmem:[#allocation9 + $0x1f4] ss:$8 sps:$4 sm:$0xff]  }
 0x149   :  { %3160 = vmatpush3.bf16.msra.mxu1 %v3705_v7 }
 0x14a   :  { %3161 = vmatprep.subr.bf16.mxu1 %v3706_v8 }
 0x14d   :  { %3162 = vmatpush3.bf16.msra.mxu1 %v3707_v10 }
 0x14e   :  { %3163 = vmatprep.subr.bf16.mxu1 %v3708_v11 }
 0x1ce   :  { %v1783_v17 = vpop.f32.mrb[0].mxu0 }
 0x1cf   :  { %v3204_v18 = vadd.f32 %v1783_v17, %v490_v15  ;;  %v1785_v19 = vpop.f32.mrb[1].mxu0  ;;  %v3695_v17 = vld [vmem:[#allocation9 + $0x1f0] ss:$8 sps:$4 sm:$0xff]  }
 0x1d0   :  { %v3206_v20 = vadd.f32 %v1785_v19, %v494_v16  ;;  %v1787_v21 = vpop.f32.mrb[2].mxu0 }
 0x1d1   :  { %v3205_v22 = vadd.f32 %v3204_v18, %v1826_v48  ;;  %v3208_v23 = vadd.f32 %v1787_v21, %v490_v15  ;;  %v1789_v24 = vpop.f32.mrb[3].mxu0  ;;  %v3673_v48 = vld [vmem:[#allocation9 + $0x174] ss:$8 sps:$4 sm:$0xff]  }
 0x1d2   :  { %v3207_v25 = vadd.f32 %v3206_v20, %v1828_v49  ;;  %v3210_v26 = vadd.f32 %v1789_v24, %v494_v16  ;;  %v3671_v49 = vld [vmem:[#allocation9 + $0x170] ss:$8 sps:$4 sm:$0xff]   ;;  %v3709_v24 = vld [vmem:[%s4070_s4 + $0x28] sm:$0xff]  }
 0x1d3   :  { %v3209_v27 = vadd.f32 %v3208_v23, %v3970_v50  ;;  %v2007_v30 = vmax.f32 %v3205_v22, 0.0  ;;  %v3676_v50 = vld [vmem:[#allocation9 + $0x184] ss:$8 sps:$4 sm:$0xff]   ;;  %3164 = vmatpush3.bf16.msra.mxu1 %v3709_v24 }
 0x1d4   :  { %v3211_v29 = vadd.f32 %v3210_v26, %v1832_v52  ;;  %v2008_v32 = vmax.f32 %v3207_v25, 0.0  ;;  %v3679_v52 = vld [vmem:[#allocation9 + $0x194] ss:$8 sps:$4 sm:$0xff]  }
 0x1d5   :  { %v2011_v31 = vmax.f32 %v3209_v27, 0.0  ;;  %v3710_v25 = vld [vmem:[%s4070_s4 + $0x70] sm:$0xff]   ;;  %v3712_v27 = vld [vmem:[%s4070_s4 + $0x78] sm:$0xff]  }
 0x1d6   :  { %v2012_v33 = vmax.f32 %v3211_v29, 0.0  ;;  %v3711_v26 = vld [vmem:[%s4070_s4 + $0x30] sm:$0xff]   ;;  %3165 = vmatprep.subr.bf16.mxu1 %v3710_v25  ;;  %v3713_v29 = vld [vmem:[%s4070_s4 + $0x38] sm:$0xff]  }
 0x1d7   :  { %v2015_v34 = vpack.c.bf16 %v2011_v31, %v2007_v30  ;;  %3166 = vmatpush3.bf16.msra.mxu1 %v3711_v26  ;;  %v2083_v30 = vld [vmem:[%s4069_s3] sm:$0x3] }
 0x1d8   :  { %v2016_v35 = vpack.c.bf16 %v2012_v33, %v2008_v32  ;;  %3167 = vmatprep.subr.bf16.mxu1 %v3712_v27  ;;  %v2088_v31 = vrot.slane %v2083_v30, %v489_v12  ;;  %v2092_v32 = vrot.slane %v2083_v30, %v493_v14  ;;  %v3716_v12 = vld [vmem:[#allocation11 + $0x10] sm:$0xff]   ;;  %v3717_v14 = vld [vmem:[#allocation11 + $0x18] sm:$0xff]  }
 0x1da   :  { %2447 = vmatprep.mubr.bf16.mxu0 %v2016_v35 }
 0x1db   :  { %2448 = vmatmul.mubr.bf16.vlgmr.msra.gmra.mrb[4].mxu0 %v2015_v34  ;;  %3168 = vmatpush3.bf16.msra.mxu1 %v3713_v29 }
 0x1dc   :  { %2459 = vmatpush1.bf16.msra.mxu0 %v3650_v36  ;;  %3184 = vmatprep.subr.bf16.mxu1 %v3803_v9 }
 0x1dd   :  { %2460 = vmatprep.subr.bf16.mxu0 %v3655_v37 }
 0x1e0   :  { %2461 = vmatpush1.bf16.msra.mxu0 %v3653_v38 }
 0x1e1   :  { %2462 = vmatprep.subr.bf16.mxu0 %v3658_v39 }
 0x1e4   :  { %2463 = vmatpush1.bf16.msra.mxu0 %v3656_v40 }
 0x1e5   :  { %2464 = vmatprep.subr.bf16.mxu0 %v3661_v41 }
 0x1e8   :  { %2465 = vmatpush1.bf16.msra.mxu0 %v3659_v42 }
 0x1e9   :  { %2466 = vmatprep.subr.bf16.mxu0 %v3664_v43 }
 0x1ec   :  { %2467 = vmatpush1.bf16.msra.mxu0 %v3662_v3 }
 0x1ed   :  { %2468 = vmatprep.subr.bf16.mxu0 %v3667_v44 }
 0x1f0   :  { %2469 = vmatpush1.bf16.msra.mxu0 %v3665_v45 }
 0x1f1   :  { %2470 = vmatprep.subr.bf16.mxu0 %v3670_v46  ;;  %v3714_v46 = vld [vmem:[#allocation11] sm:$0xff]  }
 0x1f4   :  { %2471 = vmatpush1.bf16.msra.mxu0 %v3668_v47  ;;  %v3718_v47 = vld [vmem:[#allocation11 + $0x20] sm:$0xff]  }
 0x1f5   :  { %2472 = vmatprep.subr.bf16.mxu0 %v3673_v48  ;;  %v3719_v48 = vld [vmem:[#allocation11 + $0x28] sm:$0xff]  }
 0x1f8   :  { %2473 = vmatpush1.bf16.msra.mxu0 %v3671_v49  ;;  %v3720_v49 = vld [vmem:[#allocation11 + $0x30] sm:$0xff]  }
 0x1f9   :  { %2474 = vmatprep.subr.bf16.mxu0 %v3676_v50  ;;  %v3721_v50 = vld [vmem:[#allocation11 + $0x38] sm:$0xff]  }
 0x1fc   :  { %2475 = vmatpush1.bf16.msra.mxu0 %v3674_v51 }
 0x1fd   :  { %2476 = vmatprep.subr.bf16.mxu0 %v3679_v52  ;;  %v3107_v52 = vld [vmem:[%s4071_s5] ss:$0 sm:$0xff] }
 0x200   :  { %2477 = vmatpush1.bf16.msra.mxu0 %v3677_v53 }
 0x201   :  { %2478 = vmatprep.subr.bf16.mxu0 %v3682_v54 }
 0x204   :  { %2479 = vmatpush1.bf16.msra.mxu0 %v3680_v55 }
 0x205   :  { %2480 = vmatprep.subr.bf16.mxu0 %v3685_v56 }
 0x208   :  { %2481 = vmatpush1.bf16.msra.mxu0 %v3683_v57 }
 0x209   :  { %2482 = vmatprep.subr.bf16.mxu0 %v3688_v58 }
 0x20c   :  { %2483 = vmatpush1.bf16.msra.mxu0 %v3686_v59 }
 0x20d   :  { %2484 = vmatprep.subr.bf16.mxu0 %v3691_v60 }
 0x20f   :  { %v1998_v5 = vpop.f32.mrb[4].mxu1 }
 0x210   :  { %2485 = vmatpush1.bf16.msra.mxu0 %v3689_v63  ;;  %v3212_v7 = vadd.f32 %v1998_v5, %v498_v2  ;;  %v2000_v8 = vpop.f32.mrb[5].mxu1 }
 0x211   :  { %2486 = vmatprep.subr.bf16.mxu0 %v3694_v0  ;;  %v3213_v10 = vadd.f32 %v2000_v8, %v502_v4  ;;  %v2002_v11 = vpop.f32.mrb[6].mxu1 }
 0x212   :  { %v3214_v15 = vadd.f32 %v2002_v11, %v498_v2  ;;  %v2004_v16 = vpop.f32.mrb[7].mxu1  ;;  %v2009_v19 = vmax.f32 %v3212_v7, 0.0 }
 0x213   :  { %v3215_v18 = vadd.f32 %v2004_v16, %v502_v4  ;;  %v2010_v21 = vmax.f32 %v3213_v10, 0.0 }
 0x214   :  { %2487 = vmatpush1.bf16.msra.mxu0 %v3692_v1  ;;  %v2013_v20 = vmax.f32 %v3214_v15, 0.0 }
 0x215   :  { %2488 = vmatprep.subr.bf16.mxu0 %v3697_v6  ;;  %v2014_v22 = vmax.f32 %v3215_v18, 0.0 }
 0x216   :  { %v2017_v13 = vpack.c.bf16 %v2013_v20, %v2009_v19 }
 0x217   :  { %v2018_v23 = vpack.c.bf16 %v2014_v22, %v2010_v21 }
 0x218   :  { %2489 = vmatpush1.bf16.msra.mxu0 %v3695_v17 }
 0x219   :  { %2490 = vmatprep.mubr.bf16.mxu0 %v2018_v23 }
 0x21b   :  { %2491 = vmatmul.mubr.bf16.vlgmr.msra.gmra.mrb[4].mxu0 %v2017_v13 }
 0x2ee   :  { %v2492_v33 = vpop.f32.mrb[4].mxu0 }
 0x2ef   :  { %v3216_v34 = vadd.f32 %v2492_v33, %v2088_v31  ;;  %v2494_v35 = vpop.f32.mrb[5].mxu0 }
 0x2f0   :  { %v3217_v36 = vadd.f32 %v2494_v35, %v2092_v32  ;;  %v2496_v37 = vpop.f32.mrb[6].mxu0 }
 0x2f1   :  { %v3218_v38 = vadd.f32 %v2496_v37, %v2088_v31  ;;  %v2498_v39 = vpop.f32.mrb[7].mxu0  ;;  %v2501_v41 = vmax.f32 %v3216_v34, 0.0 }
 0x2f2   :  { %v3219_v40 = vadd.f32 %v2498_v39, %v2092_v32  ;;  %v2502_v43 = vmax.f32 %v3217_v36, 0.0 }
 0x2f3   :  { %v2503_v42 = vmax.f32 %v3218_v38, 0.0 }
 0x2f4   :  { %v2504_v3 = vmax.f32 %v3219_v40, 0.0 }
 0x2f5   :  { %v2505_v44 = vpack.c.bf16 %v2503_v42, %v2501_v41 }
 0x2f6   :  { %v2506_v45 = vpack.c.bf16 %v2504_v3, %v2502_v43 }
 0x2f8   :  { %2674 = vmatprep.mubr.bf16.mxu1 %v2506_v45 }
 0x2f9   :  { %2675 = vmatmul.mubr.bf16.vlgmr.msra.gmra.mrb[8].mxu1 %v2505_v44 }
 0x2fa   :  { %3185 = vmatpush3.bf16.msra.mxu1 %v3714_v46  ;;  %3200 = vmatprep.mubr.msk.bf16.mxu1 %vm3804_vm2, %v3803_v9 }
 0x2fb   :  { %3186 = vmatprep.subr.bf16.mxu1 %v3803_v9 }
 0x2fe   :  { %3187 = vmatpush3.bf16.msra.mxu1 %v3715_v28 }
 0x2ff   :  { %3188 = vmatprep.subr.bf16.mxu1 %v3803_v9 }
 0x302   :  { %3189 = vmatpush3.bf16.msra.mxu1 %v3716_v12 }
 0x303   :  { %3190 = vmatprep.subr.bf16.mxu1 %v3803_v9 }
 0x306   :  { %3191 = vmatpush3.bf16.msra.mxu1 %v3717_v14 }
 0x307   :  { %3192 = vmatprep.subr.bf16.mxu1 %v3803_v9 }
 0x30a   :  { %3193 = vmatpush3.bf16.msra.mxu1 %v3718_v47 }
 0x30b   :  { %3194 = vmatprep.subr.bf16.mxu1 %v3803_v9 }
 0x30e   :  { %3195 = vmatpush3.bf16.msra.mxu1 %v3719_v48 }
 0x30f   :  { %3196 = vmatprep.subr.bf16.mxu1 %v3803_v9 }
 0x312   :  { %3197 = vmatpush3.bf16.msra.mxu1 %v3720_v49 }
 0x313   :  { %3198 = vmatprep.subr.bf16.mxu1 %v3803_v9  ;;  %v3124_v9 = vld [vmem:[%s4073_s7] ss:$0 sm:$0xff] }
 0x316   :  { %3199 = vmatpush3.bf16.msra.mxu1 %v3721_v50 }
 0x3cc   :  { %v3169_v51 = vpop.f32.mrb[8].mxu1 }
 0x3cd   :  { %v3170_v53 = vpop.f32.mrb[9].mxu1 }
 0x3ce   :  { %v3171_v54 = vadd.f32 %v3170_v53, %v3169_v51  ;;  %v3172_v55 = vpop.f32.mrb[10].mxu1 }
 0x3cf   :  { %v3173_v56 = vpop.f32.mrb[11].mxu1 }
 0x3d0   :  { %v2677_v57 = vadd.f32 %v3171_v54, %v3107_v52  ;;  %v3174_v58 = vadd.f32 %v3173_v56, %v3172_v55 }
 0x3d2   :  { %v2680_v59 = vadd.f32 %v3174_v58, %v3107_v52  ;;  %v2683_v60 = vmax.f32 %v2677_v57, 0.0 }
 0x3d4   :  { %v2684_v61 = vmax.f32 %v2680_v59, 0.0 }
 0x3d6   :  { %v2685_v62 = vpack.c.bf16 %v2684_v61, %v2683_v60 }
 0x3d8   :  { %3201 = vmatmul.mubr.bf16.vlgmr.msra.gmra.mrb[12].mxu1 %v2685_v62 }
 0x4ab   :  { %v2791_v63 = vpop.f32.mrb[12].mxu1 }
 0x4ac   :  { %v2792_v0 = vadd.f32 %v3124_v9, %v2791_v63  ;;  %v3202_v2 = vpop.f32.mrb[13].mxu1 }
 0x4ad   :  { %v2794_v4 = vpop.f32.mrb[14].mxu1 }
 0x4ae   :  { %2798 = vst [vmem:[%s4076_s10] sm:$0xff] %v2792_v0  ;;  %v2795_v1 = vadd.f32 %v3124_v9, %v2794_v4  ;;  %v3203_v5 = vpop.f32.mrb[15].mxu1 }
 0x4b0   :  { %2799 = vst [vmem:[%s4076_s10 + $0x8] sm:$0xff] %v2795_v1 }
 0x4b1   :  { %2804 = vsyncpa [#allocation8], 1 }
 0x4b2   :  { %2805 = vsyncpa [#allocation10], 1 }

</bundles_post_ra>
